<compile_context>
chip_gen: v7x
topology: tpu7x:2x2x1
jax: 0.10.0
libtpu: 0.0.40
codegen_flags: <defaults>
</compile_context>

<pallas_src>
import functools

import jax
import jax.numpy as jnp
from jax.experimental import pallas as pl
from jax.experimental.pallas import tpu as pltpu


@functools.lru_cache(maxsize=None)
def _vmem_limit_bytes():
    """Generation-dependent scoped-VMEM cap: ~3/4 of physical (96 MiB on
    v5e/v6e's 128 MiB, 48 MiB on v7x's 64 MiB), with a safe fallback."""
    default = 48 * 1024 * 1024
    try:
        cap = getattr(pltpu.get_tpu_info(), "vmem_capacity_bytes", None)
        if cap:
            return int(min(cap * 3 // 4, 100 * 1024 * 1024))
    except Exception:
        pass
    return default


# ----------------------------------------------------------------------------
# Kernel 1: fused  relu(x @ W1 + b1) @ W2, tiled over rows (M = B*T).
# Weights stay resident in VMEM; x/W1/W2 may be pre-cast to bf16 in the
# wrapper so the kernel does no per-tile weight casts (only the unavoidable
# cast of the post-ReLU intermediate for the second MXU matmul).
# ----------------------------------------------------------------------------
def _linear_project_kernel(x_ref, w1_ref, b1_ref, w2_ref, o_ref, *, mid_dtype):
    h = jnp.dot(x_ref[...], w1_ref[...], preferred_element_type=jnp.float32)
    h = jnp.maximum(h + b1_ref[...], 0.0)          # bias add + ReLU in f32
    o_ref[...] = jnp.dot(h.astype(mid_dtype), w2_ref[...],
                         preferred_element_type=jnp.float32)


def fused_linear_project(x2d, w1, b1, w2, *, tile_m=512):
    M, Din = x2d.shape
    H = w1.shape[1]
    Dout = w2.shape[1]
    tm = M if M <= tile_m else tile_m
    kern = functools.partial(_linear_project_kernel, mid_dtype=w2.dtype)
    return pl.pallas_call(
        kern,
        out_shape=jax.ShapeDtypeStruct((M, Dout), jnp.float32),
        grid=(pl.cdiv(M, tm),),
        in_specs=[
            pl.BlockSpec((tm, Din), lambda i: (i, 0)),
            pl.BlockSpec((Din, H), lambda i: (0, 0)),
            pl.BlockSpec((1, H), lambda i: (0, 0)),
            pl.BlockSpec((H, Dout), lambda i: (0, 0)),
        ],
        out_specs=pl.BlockSpec((tm, Dout), lambda i: (i, 0)),
        compiler_params=pltpu.CompilerParams(
            dimension_semantics=("parallel",),
            vmem_limit_bytes=_vmem_limit_bytes()),
    )(x2d, w1, b1, w2)


# ----------------------------------------------------------------------------
# Kernel 2: one DilatedDenseNet layer per batch grid point:
#   grouped dilated conv -> InstanceNorm2d(affine) -> PReLU -> (+ residual).
# The kernel receives the G source slabs separately (no HBM concat), builds a
# time-zero-padded copy of each slab in VMEM (zeroing only the pad rows),
# accumulates the TW dilated taps in registers on the VPU, and reduces the G
# virtual channels of each group with a small 0/1-selection matmul on the MXU.
# ----------------------------------------------------------------------------
def _make_conv_kernel(*, G, C, TW, dil, T, pad, eps, add_residual):
    use_sel = G > 1

    def kernel(*refs):
        slabs = refs[:G]
        idx = G
        w_ref = refs[idx]; idx += 1
        sel_ref = None
        if use_sel:
            sel_ref = refs[idx]; idx += 1
        gamma_ref, beta_ref, slope_ref = refs[idx], refs[idx + 1], refs[idx + 2]
        idx += 3
        res_ref = None
        if add_residual:
            res_ref = refs[idx]; idx += 1
        o_ref = refs[idx]; idx += 1
        pad_scr = refs[idx]                          # (G, T+2*pad, C) VMEM

        # 1) Zero-padded (in time) slabs in VMEM: zero only the boundary rows,
        #    then copy the data band once (no full zero-fill, no acc scratch).
        for q in range(G):
            if pad > 0:
                zrows = jnp.zeros((pad, C), jnp.float32)
                pad_scr[q, pl.ds(0, pad), :] = zrows
                pad_scr[q, pl.ds(pad + T, pad), :] = zrows
            pad_scr[q, pl.ds(pad, T), :] = slabs[q][0]

        # 2) Dilated taps accumulated in registers (value accumulation), then
        # 3) grouped-conv channel reduction via a 0/1-selection matmul (MXU).
        # TODO(synk): tap offsets k*dil are sublane-misaligned for dil in
        # {1,2,4}; an XLU-roll / stride-0 broadcast-weight-load / per-tap MXU
        # selection-matmul variant could offload the VALU further.
        w = w_ref[...]                               # (TW, G*C), loaded once
        acc = None
        for q in range(G):
            wq = w[:, q * C:(q + 1) * C]             # (TW, C)
            a = pad_scr[q, pl.ds(0, T), :] * wq[0:1, :]
            for k in range(1, TW):                   # static unroll over taps
                a = a + pad_scr[q, pl.ds(k * dil, T), :] * wq[k:k + 1, :]
            if use_sel:
                a = jnp.dot(a, sel_ref[pl.ds(q * C, C), :],
                            preferred_element_type=jnp.float32)
            acc = a if acc is None else acc + a      # (T, C)

        # 4) InstanceNorm2d: single-pass per-(sample, channel) stats over time
        #    (biased variance, eps inside sqrt -- same as PyTorch).
        inv_t = 1.0 / T
        mean = jnp.sum(acc, axis=0, keepdims=True) * inv_t
        ex2 = jnp.sum(acc * acc, axis=0, keepdims=True) * inv_t
        var = ex2 - mean * mean
        y = (acc - mean) * jax.lax.rsqrt(var + eps)
        y = y * gamma_ref[...] + beta_ref[...]

        # 5) PReLU with per-channel slope.
        y = jnp.where(y >= 0.0, y, slope_ref[...] * y)

        # 6) Fused residual (final layer only; no zeros DMA otherwise).
        if res_ref is not None:
            y = y + res_ref[0]
        o_ref[0] = y

    return kernel


def dilated_conv_layer(slabs, w_full, sel, gamma, beta, slope, res, *,
                       G, TW, dil, pad, add_residual, eps=1e-5):
    B, T, C = slabs[0].shape
    T_pad = T + 2 * pad
    kernel = _make_conv_kernel(G=G, C=C, TW=TW, dil=dil, T=T, pad=pad,
                               eps=eps, add_residual=add_residual)

    slab_spec = pl.BlockSpec((1, T, C), lambda b: (b, 0, 0))
    in_specs = [slab_spec] * G
    args = list(slabs)
    in_specs.append(pl.BlockSpec((TW, G * C), lambda b: (0, 0)))   # tap weights
    args.append(w_full)
    if G > 1:
        in_specs.append(pl.BlockSpec((G * C, C), lambda b: (0, 0)))  # selection
        args.append(sel)
    in_specs += [pl.BlockSpec((1, C), lambda b: (0, 0))] * 3       # gamma/beta/slope
    args += [gamma, beta, slope]
    if add_residual:
        in_specs.append(slab_spec)                                 # residual
        args.append(res)

    # TODO(synk): at very large T*C (v7x, 64 MiB VMEM) re-introduce a channel
    # or time tile grid axis (and >=2 parallel grid points when B == 1).
    return pl.pallas_call(
        kernel,
        out_shape=jax.ShapeDtypeStruct((B, T, C), jnp.float32),
        grid=(B,),
        in_specs=in_specs,
        out_specs=pl.BlockSpec((1, T, C), lambda b: (b, 0, 0)),
        scratch_shapes=[pltpu.VMEM((G, T_pad, C), jnp.float32)],
        compiler_params=pltpu.CompilerParams(
            dimension_semantics=("parallel",),
            vmem_limit_bytes=_vmem_limit_bytes()),
    )(*args)


# ----------------------------------------------------------------------------
# Full forward (thin JAX glue; all hot paths in the Pallas kernels above).
# ----------------------------------------------------------------------------
def uni_deep_fsmn_dilated(x, params, *, lorder, depth,
                          mxu_dtype=jnp.float32, tile_m=512):
    B, T, Din = x.shape
    w1, b1, w2 = params["w1"], params["b1"], params["w2"]
    C = w2.shape[1]                       # output_dim (== input_dim for residual)
    assert C == Din, "residual add requires output_dim == input_dim"
    TW = 2 * lorder - 1

    use_bf16 = jnp.dtype(mxu_dtype) == jnp.dtype(jnp.bfloat16)
    x2d = x.reshape(B * T, Din)
    if use_bf16:                          # pre-cast in the wrapper (halves DMA)
        x2d, w1, w2 = (x2d.astype(jnp.bfloat16), w1.astype(jnp.bfloat16),
                       w2.astype(jnp.bfloat16))
    p1 = fused_linear_project(x2d, w1, b1, w2, tile_m=tile_m).reshape(B, T, C)

    # TODO(synk): optionally keep the p1/out slabs in bf16 to halve the conv
    # layers' HBM traffic on v5e/v6e (f32 kept here for bit-level parity).
    slabs = [p1]     # torch-concat order: [out_{i-1}, ..., out_0, p1]
    out = p1
    for i in range(depth):
        G = i + 1
        dil = 2 ** i
        pad = lorder + (dil - 1) * (lorder - 1) - 1        # == dil*(lorder-1)
        # (TW, C*G) tap weights: column g*G + j holds torch weight[g, j, k, 0].
        w_full = jnp.transpose(params["conv_w"][i], (2, 0, 1)).reshape(TW, C * G)
        sel = None
        if G > 1:
            # 0/1 group-reduction matrix over virtual concat channels.
            sel = (jnp.arange(C * G)[:, None] // G ==
                   jnp.arange(C)[None, :]).astype(jnp.float32)
        add_res = (i == depth - 1)
        out = dilated_conv_layer(
            slabs, w_full, sel, params["gamma"][i], params["beta"][i],
            params["slope"][i], x if add_res else None,
            G=G, TW=TW, dil=dil, pad=pad, add_residual=add_res)
        slabs = [out] + slabs              # no HBM concat, just a list
    return out


# ----------------------------------------------------------------------------
# Pure-jnp reference implementing the exact PyTorch semantics (grouped Conv2d
# with consecutive-channel groups, InstanceNorm2d, PReLU, residual).
# ----------------------------------------------------------------------------
def reference_forward(x, params, *, lorder, depth):
    B, T, _ = x.shape
    f1 = jax.nn.relu(x @ params["w1"] + params["b1"])
    p1 = f1 @ params["w2"]
    C = p1.shape[-1]
    TW = 2 * lorder - 1
    skip = p1
    out = p1
    for i in range(depth):
        G = i + 1
        dil = 2 ** i
        pad = lorder + (dil - 1) * (lorder - 1) - 1
        sp = jnp.pad(skip, ((0, 0), (pad, pad), (0, 0)))
        w = params["conv_w"][i]                            # (C, G, TW)
        acc = jnp.zeros((B, T, C), jnp.float32)
        for k in range(TW):
            seg = sp[:, k * dil: k * dil + T, :].reshape(B, T, C, G)
            acc = acc + jnp.einsum("btgj,gj->btg", seg, w[:, :, k])
        mean = acc.mean(axis=1, keepdims=True)
        var = ((acc - mean) ** 2).mean(axis=1, keepdims=True)
        y = (acc - mean) / jnp.sqrt(var + 1e-5)
        y = y * params["gamma"][i] + params["beta"][i]
        y = jnp.where(y >= 0.0, y, params["slope"][i] * y)
        out = y
        skip = jnp.concatenate([out, skip], axis=-1)
    return x + out


if __name__ == "__main__":
    B, T = 2, 16
    input_dim = 32
    output_dim = 32          # must equal input_dim for the residual add
    hidden = 64
    lorder = 3
    depth = 2
    TW = 2 * lorder - 1

    key = jax.random.PRNGKey(0)
    ks = jax.random.split(key, 10)
    params = {
        "w1": jax.random.normal(ks[0], (input_dim, hidden), jnp.float32) * 0.1,
        "b1": jax.random.normal(ks[1], (1, hidden), jnp.float32) * 0.1,
        "w2": jax.random.normal(ks[2], (hidden, output_dim), jnp.float32) * 0.1,
        # conv_w[i][g, j, k] == torch conv{i+1}.weight[g, j, k, 0]  (shape (C, i+1, TW))
        "conv_w": [jax.random.normal(ks[3 + i], (output_dim, i + 1, TW),
                                     jnp.float32) * 0.2 for i in range(depth)],
        "gamma": [1.0 + 0.1 * jax.random.normal(ks[5 + i], (1, output_dim), jnp.float32)
                  for i in range(depth)],
        "beta": [0.1 * jax.random.normal(ks[7 + i], (1, output_dim), jnp.float32)
                 for i in range(depth)],
        "slope": [jnp.full((1, output_dim), 0.25, jnp.float32) for _ in range(depth)],
    }
    x = jax.random.normal(ks[9], (B, T, input_dim), jnp.float32)

    # f32 path: strict check against the PyTorch-equivalent reference.
    fwd = jax.jit(functools.partial(uni_deep_fsmn_dilated, lorder=lorder, depth=depth))
    out = jax.block_until_ready(fwd(x, params))
    assert out.shape == (B, T, output_dim)

    ref = reference_forward(x, params, lorder=lorder, depth=depth)
    err = float(jnp.max(jnp.abs(out - ref)))
    if err > 2e-3:
        raise AssertionError(f"kernel/reference mismatch (f32), max abs err = {err}")

    # bf16 MXU path (v5e/v6e/v7x optimization): loose accuracy check vs f32 ref.
    fwd_bf16 = jax.jit(functools.partial(uni_deep_fsmn_dilated, lorder=lorder,
                                         depth=depth, mxu_dtype=jnp.bfloat16))
    out_bf16 = jax.block_until_ready(fwd_bf16(x, params))
    assert out_bf16.shape == (B, T, output_dim)
    assert bool(jnp.all(jnp.isfinite(out_bf16)))
    err_bf16 = float(jnp.max(jnp.abs(out_bf16 - ref)))
    if err_bf16 > 0.3:
        raise AssertionError(f"kernel/reference mismatch (bf16), max abs err = {err_bf16}")

    print("KERNEL_OK")
</pallas_src>

<mosaic_0001>
module attributes {stable_mosaic.version = 11 : i64} {
  func.func @_linear_project_kernel(%arg0: i32, %arg1: memref<32x32xf32, #tpu.memory_space<vmem>>, %arg2: memref<32x64xf32, #tpu.memory_space<vmem>>, %arg3: memref<1x64xf32, #tpu.memory_space<vmem>>, %arg4: memref<64x32xf32, #tpu.memory_space<vmem>>, %arg5: memref<32x32xf32, #tpu.memory_space<vmem>>) attributes {dimension_semantics = [#tpu.dimension_semantics<parallel>], iteration_bounds = array<i64: 1>, scalar_prefetch = 0 : i64, scratch_operands = 0 : i64, tpu.core_type = #tpu.core_type<tc>, window_params = [{transform_indices = @transform_0, window_bounds = array<i64: 32, 32>}, {pipeline_mode = #tpu.pipeline_mode<synchronous>, transform_indices = @transform_1, window_bounds = array<i64: 32, 64>}, {pipeline_mode = #tpu.pipeline_mode<synchronous>, transform_indices = @transform_2, window_bounds = array<i64: 1, 64>}, {pipeline_mode = #tpu.pipeline_mode<synchronous>, transform_indices = @transform_3, window_bounds = array<i64: 64, 32>}, {transform_indices = @transform_4, window_bounds = array<i64: 32, 32>}]} {
    %c0 = arith.constant 0 : index
    %c0_0 = arith.constant 0 : index
    %0 = vector.load %arg1[%c0, %c0_0] : memref<32x32xf32, #tpu.memory_space<vmem>>, vector<32x32xf32>
    %c0_1 = arith.constant 0 : index
    %c0_2 = arith.constant 0 : index
    %1 = vector.load %arg2[%c0_1, %c0_2] : memref<32x64xf32, #tpu.memory_space<vmem>>, vector<32x64xf32>
    %cst = arith.constant dense<0.000000e+00> : vector<32x64xf32>
    %2 = tpu.matmul %0, %1, %cst {dimension_numbers = #tpu.dot_dimension_numbers<[1], [0], [0], [1], [0, 0, 1, 1], [], []>} : vector<32x32xf32>, vector<32x64xf32>, vector<32x64xf32> -> vector<32x64xf32>
    %c0_3 = arith.constant 0 : index
    %c0_4 = arith.constant 0 : index
    %3 = vector.load %arg3[%c0_3, %c0_4] : memref<1x64xf32, #tpu.memory_space<vmem>>, vector<1x64xf32>
    %4 = vector.broadcast %3 : vector<1x64xf32> to vector<32x64xf32>
    %5 = arith.addf %2, %4 : vector<32x64xf32>
    %cst_5 = arith.constant 0.000000e+00 : f32
    %6 = vector.broadcast %cst_5 : f32 to vector<32x64xf32>
    %7 = arith.maximumf %5, %6 : vector<32x64xf32>
    %c0_6 = arith.constant 0 : index
    %c0_7 = arith.constant 0 : index
    %8 = vector.load %arg4[%c0_6, %c0_7] : memref<64x32xf32, #tpu.memory_space<vmem>>, vector<64x32xf32>
    %cst_8 = arith.constant dense<0.000000e+00> : vector<32x32xf32>
    %9 = tpu.matmul %7, %8, %cst_8 {dimension_numbers = #tpu.dot_dimension_numbers<[1], [0], [0], [1], [0, 0, 1, 1], [], []>} : vector<32x64xf32>, vector<64x32xf32>, vector<32x32xf32> -> vector<32x32xf32>
    %c0_9 = arith.constant 0 : index
    %c0_10 = arith.constant 0 : index
    %10 = vector.load %arg5[%c0_9, %c0_10] : memref<32x32xf32, #tpu.memory_space<vmem>>, vector<32x32xf32>
    tpu.vector_store %arg5[%c0_9, %c0_10], %9 {strides = array<i32>} : memref<32x32xf32, #tpu.memory_space<vmem>>, vector<32x32xf32>,
    return
  }
  func.func @transform_0(%arg0: i32) -> (i32, i32) {
    %c0_i32 = arith.constant 0 : i32
    %c0_i32_0 = arith.constant 0 : i32
    return %arg0, %c0_i32 : i32, i32
  }
  func.func @transform_1(%arg0: i32) -> (i32, i32) {
    %c0_i32 = arith.constant 0 : i32
    %c0_i32_0 = arith.constant 0 : i32
    %c0_i32_1 = arith.constant 0 : i32
    return %c0_i32, %c0_i32_0 : i32, i32
  }
  func.func @transform_2(%arg0: i32) -> (i32, i32) {
    %c0_i32 = arith.constant 0 : i32
    %c0_i32_0 = arith.constant 0 : i32
    %c0_i32_1 = arith.constant 0 : i32
    return %c0_i32, %c0_i32_0 : i32, i32
  }
  func.func @transform_3(%arg0: i32) -> (i32, i32) {
    %c0_i32 = arith.constant 0 : i32
    %c0_i32_0 = arith.constant 0 : i32
    %c0_i32_1 = arith.constant 0 : i32
    return %c0_i32, %c0_i32_0 : i32, i32
  }
  func.func @transform_4(%arg0: i32) -> (i32, i32) {
    %c0_i32 = arith.constant 0 : i32
    %c0_i32_0 = arith.constant 0 : i32
    return %arg0, %c0_i32 : i32, i32
  }
}

module attributes {stable_mosaic.version = 11 : i64} {
  func.func @kernel(%arg0: i32, %arg1: memref<1x16x32xf32, #tpu.memory_space<vmem>>, %arg2: memref<5x32xf32, #tpu.memory_space<vmem>>, %arg3: memref<1x32xf32, #tpu.memory_space<vmem>>, %arg4: memref<1x32xf32, #tpu.memory_space<vmem>>, %arg5: memref<1x32xf32, #tpu.memory_space<vmem>>, %arg6: memref<1x16x32xf32, #tpu.memory_space<vmem>>, %arg7: memref<1x20x32xf32, #tpu.memory_space<vmem>>) attributes {dimension_semantics = [#tpu.dimension_semantics<parallel>], iteration_bounds = array<i64: 2>, scalar_prefetch = 0 : i64, scratch_operands = 1 : i64, tpu.core_type = #tpu.core_type<tc>, window_params = [{transform_indices = @transform_0, window_bounds = array<i64: 1, 16, 32>}, {pipeline_mode = #tpu.pipeline_mode<synchronous>, transform_indices = @transform_1, window_bounds = array<i64: 5, 32>}, {pipeline_mode = #tpu.pipeline_mode<synchronous>, transform_indices = @transform_2, window_bounds = array<i64: 1, 32>}, {pipeline_mode = #tpu.pipeline_mode<synchronous>, transform_indices = @transform_3, window_bounds = array<i64: 1, 32>}, {pipeline_mode = #tpu.pipeline_mode<synchronous>, transform_indices = @transform_4, window_bounds = array<i64: 1, 32>}, {transform_indices = @transform_5, window_bounds = array<i64: 1, 16, 32>}]} {
    %cst = arith.constant 0.000000e+00 : f32
    %0 = vector.broadcast %cst : f32 to vector<2x32xf32>
    %c0 = arith.constant 0 : index
    %c0_0 = arith.constant 0 : index
    %c0_1 = arith.constant 0 : index
    %1 = vector.load %arg7[%c0, %c0_0, %c0_1] : memref<1x20x32xf32, #tpu.memory_space<vmem>>, vector<1x2x32xf32>
    %2 = vector.shape_cast %1 : vector<1x2x32xf32> to vector<2x32xf32>
    %3 = vector.shape_cast %0 : vector<2x32xf32> to vector<1x2x32xf32>
    tpu.vector_store %arg7[%c0, %c0_0, %c0_1], %3 {strides = array<i32>} : memref<1x20x32xf32, #tpu.memory_space<vmem>>, vector<1x2x32xf32>,
    %c0_2 = arith.constant 0 : index
    %c18 = arith.constant 18 : index
    %c0_3 = arith.constant 0 : index
    %4 = vector.load %arg7[%c0_2, %c18, %c0_3] : memref<1x20x32xf32, #tpu.memory_space<vmem>>, vector<1x2x32xf32>
    %5 = vector.shape_cast %4 : vector<1x2x32xf32> to vector<2x32xf32>
    %6 = vector.shape_cast %0 : vector<2x32xf32> to vector<1x2x32xf32>
    tpu.vector_store %arg7[%c0_2, %c18, %c0_3], %6 {strides = array<i32>} : memref<1x20x32xf32, #tpu.memory_space<vmem>>, vector<1x2x32xf32>,
    %c0_4 = arith.constant 0 : index
    %c0_5 = arith.constant 0 : index
    %c0_6 = arith.constant 0 : index
    %7 = vector.load %arg1[%c0_4, %c0_5, %c0_6] : memref<1x16x32xf32, #tpu.memory_space<vmem>>, vector<1x16x32xf32>
    %8 = vector.shape_cast %7 : vector<1x16x32xf32> to vector<16x32xf32>
    %c0_7 = arith.constant 0 : index
    %c2 = arith.constant 2 : index
    %c0_8 = arith.constant 0 : index
    %9 = vector.load %arg7[%c0_7, %c2, %c0_8] : memref<1x20x32xf32, #tpu.memory_space<vmem>>, vector<1x16x32xf32>
    %10 = vector.shape_cast %9 : vector<1x16x32xf32> to vector<16x32xf32>
    %11 = vector.shape_cast %8 : vector<16x32xf32> to vector<1x16x32xf32>
    tpu.vector_store %arg7[%c0_7, %c2, %c0_8], %11 {strides = array<i32>} : memref<1x20x32xf32, #tpu.memory_space<vmem>>, vector<1x16x32xf32>,
    %c0_9 = arith.constant 0 : index
    %c0_10 = arith.constant 0 : index
    %12 = vector.load %arg2[%c0_9, %c0_10] : memref<5x32xf32, #tpu.memory_space<vmem>>, vector<5x32xf32>
    %c0_11 = arith.constant 0 : index
    %c0_12 = arith.constant 0 : index
    %c0_13 = arith.constant 0 : index
    %13 = vector.load %arg7[%c0_11, %c0_12, %c0_13] : memref<1x20x32xf32, #tpu.memory_space<vmem>>, vector<1x16x32xf32>
    %14 = vector.shape_cast %13 : vector<1x16x32xf32> to vector<16x32xf32>
    %15 = vector.extract_strided_slice %12 {offsets = [0, 0], sizes = [1, 32], strides = [1, 1]} : vector<5x32xf32> to vector<1x32xf32>
    %16 = vector.broadcast %15 : vector<1x32xf32> to vector<16x32xf32>
    %17 = arith.mulf %14, %16 : vector<16x32xf32>
    %c0_14 = arith.constant 0 : index
    %c1 = arith.constant 1 : index
    %c0_15 = arith.constant 0 : index
    %18 = vector.load %arg7[%c0_14, %c1, %c0_15] : memref<1x20x32xf32, #tpu.memory_space<vmem>>, vector<1x16x32xf32>
    %19 = vector.shape_cast %18 : vector<1x16x32xf32> to vector<16x32xf32>
    %20 = vector.extract_strided_slice %12 {offsets = [1, 0], sizes = [1, 32], strides = [1, 1]} : vector<5x32xf32> to vector<1x32xf32>
    %21 = vector.broadcast %20 : vector<1x32xf32> to vector<16x32xf32>
    %22 = arith.mulf %19, %21 : vector<16x32xf32>
    %23 = arith.addf %17, %22 : vector<16x32xf32>
    %c0_16 = arith.constant 0 : index
    %c2_17 = arith.constant 2 : index
    %c0_18 = arith.constant 0 : index
    %24 = vector.load %arg7[%c0_16, %c2_17, %c0_18] : memref<1x20x32xf32, #tpu.memory_space<vmem>>, vector<1x16x32xf32>
    %25 = vector.shape_cast %24 : vector<1x16x32xf32> to vector<16x32xf32>
    %26 = vector.extract_strided_slice %12 {offsets = [2, 0], sizes = [1, 32], strides = [1, 1]} : vector<5x32xf32> to vector<1x32xf32>
    %27 = vector.broadcast %26 : vector<1x32xf32> to vector<16x32xf32>
    %28 = arith.mulf %25, %27 : vector<16x32xf32>
    %29 = arith.addf %23, %28 : vector<16x32xf32>
    %c0_19 = arith.constant 0 : index
    %c3 = arith.constant 3 : index
    %c0_20 = arith.constant 0 : index
    %30 = vector.load %arg7[%c0_19, %c3, %c0_20] : memref<1x20x32xf32, #tpu.memory_space<vmem>>, vector<1x16x32xf32>
    %31 = vector.shape_cast %30 : vector<1x16x32xf32> to vector<16x32xf32>
    %32 = vector.extract_strided_slice %12 {offsets = [3, 0], sizes = [1, 32], strides = [1, 1]} : vector<5x32xf32> to vector<1x32xf32>
    %33 = vector.broadcast %32 : vector<1x32xf32> to vector<16x32xf32>
    %34 = arith.mulf %31, %33 : vector<16x32xf32>
    %35 = arith.addf %29, %34 : vector<16x32xf32>
    %c0_21 = arith.constant 0 : index
    %c4 = arith.constant 4 : index
    %c0_22 = arith.constant 0 : index
    %36 = vector.load %arg7[%c0_21, %c4, %c0_22] : memref<1x20x32xf32, #tpu.memory_space<vmem>>, vector<1x16x32xf32>
    %37 = vector.shape_cast %36 : vector<1x16x32xf32> to vector<16x32xf32>
    %38 = vector.extract_strided_slice %12 {offsets = [4, 0], sizes = [1, 32], strides = [1, 1]} : vector<5x32xf32> to vector<1x32xf32>
    %39 = vector.broadcast %38 : vector<1x32xf32> to vector<16x32xf32>
    %40 = arith.mulf %37, %39 : vector<16x32xf32>
    %41 = arith.addf %35, %40 : vector<16x32xf32>
    %cst_23 = arith.constant dense<0.000000e+00> : vector<32xf32>
    %42 = vector.multi_reduction <add>, %41, %cst_23 [0] : vector<16x32xf32> to vector<32xf32>
    %43 = vector.shape_cast %42 : vector<32xf32> to vector<1x32xf32>
    %cst_24 = arith.constant 6.250000e-02 : f32
    %44 = vector.broadcast %cst_24 : f32 to vector<1x32xf32>
    %45 = arith.mulf %43, %44 : vector<1x32xf32>
    %46 = arith.mulf %41, %41 : vector<16x32xf32>
    %cst_25 = arith.constant dense<0.000000e+00> : vector<32xf32>
    %47 = vector.multi_reduction <add>, %46, %cst_25 [0] : vector<16x32xf32> to vector<32xf32>
    %48 = vector.shape_cast %47 : vector<32xf32> to vector<1x32xf32>
    %cst_26 = arith.constant 6.250000e-02 : f32
    %49 = vector.broadcast %cst_26 : f32 to vector<1x32xf32>
    %50 = arith.mulf %48, %49 : vector<1x32xf32>
    %51 = arith.mulf %45, %45 : vector<1x32xf32>
    %52 = arith.subf %50, %51 : vector<1x32xf32>
    %53 = vector.broadcast %45 : vector<1x32xf32> to vector<16x32xf32>
    %54 = arith.subf %41, %53 : vector<16x32xf32>
    %cst_27 = arith.constant 9.99999974E-6 : f32
    %55 = vector.broadcast %cst_27 : f32 to vector<1x32xf32>
    %56 = arith.addf %52, %55 : vector<1x32xf32>
    %57 = math.rsqrt %56 : vector<1x32xf32>
    %58 = vector.broadcast %57 : vector<1x32xf32> to vector<16x32xf32>
    %59 = arith.mulf %54, %58 : vector<16x32xf32>
    %c0_28 = arith.constant 0 : index
    %c0_29 = arith.constant 0 : index
    %60 = vector.load %arg3[%c0_28, %c0_29] : memref<1x32xf32, #tpu.memory_space<vmem>>, vector<1x32xf32>
    %61 = vector.broadcast %60 : vector<1x32xf32> to vector<16x32xf32>
    %62 = arith.mulf %59, %61 : vector<16x32xf32>
    %c0_30 = arith.constant 0 : index
    %c0_31 = arith.constant 0 : index
    %63 = vector.load %arg4[%c0_30, %c0_31] : memref<1x32xf32, #tpu.memory_space<vmem>>, vector<1x32xf32>
    %64 = vector.broadcast %63 : vector<1x32xf32> to vector<16x32xf32>
    %65 = arith.addf %62, %64 : vector<16x32xf32>
    %cst_32 = arith.constant 0.000000e+00 : f32
    %66 = vector.broadcast %cst_32 : f32 to vector<16x32xf32>
    %67 = arith.cmpf oge, %65, %66 : vector<16x32xf32>
    %c0_33 = arith.constant 0 : index
    %c0_34 = arith.constant 0 : index
    %68 = vector.load %arg5[%c0_33, %c0_34] : memref<1x32xf32, #tpu.memory_space<vmem>>, vector<1x32xf32>
    %69 = vector.broadcast %68 : vector<1x32xf32> to vector<16x32xf32>
    %70 = arith.mulf %69, %65 : vector<16x32xf32>
    %71 = arith.select %67, %65, %70 : vector<16x32xi1>, vector<16x32xf32>
    %c0_35 = arith.constant 0 : index
    %c0_36 = arith.constant 0 : index
    %c0_37 = arith.constant 0 : index
    %72 = vector.load %arg6[%c0_35, %c0_36, %c0_37] : memref<1x16x32xf32, #tpu.memory_space<vmem>>, vector<1x16x32xf32>
    %73 = vector.shape_cast %72 : vector<1x16x32xf32> to vector<16x32xf32>
    %74 = vector.shape_cast %71 : vector<16x32xf32> to vector<1x16x32xf32>
    tpu.vector_store %arg6[%c0_35, %c0_36, %c0_37], %74 {strides = array<i32>} : memref<1x16x32xf32, #tpu.memory_space<vmem>>, vector<1x16x32xf32>,
    return
  }
  func.func @transform_0(%arg0: i32) -> (i32, i32, i32) {
    %c0_i32 = arith.constant 0 : i32
    %c0_i32_0 = arith.constant 0 : i32
    %c0_i32_1 = arith.constant 0 : i32
    return %arg0, %c0_i32, %c0_i32_0 : i32, i32, i32
  }
  func.func @transform_1(%arg0: i32) -> (i32, i32) {
    %c0_i32 = arith.constant 0 : i32
    %c0_i32_0 = arith.constant 0 : i32
    %c0_i32_1 = arith.constant 0 : i32
    return %c0_i32, %c0_i32_0 : i32, i32
  }
  func.func @transform_2(%arg0: i32) -> (i32, i32) {
    %c0_i32 = arith.constant 0 : i32
    %c0_i32_0 = arith.constant 0 : i32
    %c0_i32_1 = arith.constant 0 : i32
    return %c0_i32, %c0_i32_0 : i32, i32
  }
  func.func @transform_3(%arg0: i32) -> (i32, i32) {
    %c0_i32 = arith.constant 0 : i32
    %c0_i32_0 = arith.constant 0 : i32
    %c0_i32_1 = arith.constant 0 : i32
    return %c0_i32, %c0_i32_0 : i32, i32
  }
  func.func @transform_4(%arg0: i32) -> (i32, i32) {
    %c0_i32 = arith.constant 0 : i32
    %c0_i32_0 = arith.constant 0 : i32
    %c0_i32_1 = arith.constant 0 : i32
    return %c0_i32, %c0_i32_0 : i32, i32
  }
  func.func @transform_5(%arg0: i32) -> (i32, i32, i32) {
    %c0_i32 = arith.constant 0 : i32
    %c0_i32_0 = arith.constant 0 : i32
    %c0_i32_1 = arith.constant 0 : i32
    return %arg0, %c0_i32, %c0_i32_0 : i32, i32, i32
  }
}

module attributes {stable_mosaic.version = 11 : i64} {
  func.func @kernel(%arg0: i32, %arg1: memref<1x16x32xf32, #tpu.memory_space<vmem>>, %arg2: memref<1x16x32xf32, #tpu.memory_space<vmem>>, %arg3: memref<5x64xf32, #tpu.memory_space<vmem>>, %arg4: memref<64x32xf32, #tpu.memory_space<vmem>>, %arg5: memref<1x32xf32, #tpu.memory_space<vmem>>, %arg6: memref<1x32xf32, #tpu.memory_space<vmem>>, %arg7: memref<1x32xf32, #tpu.memory_space<vmem>>, %arg8: memref<1x16x32xf32, #tpu.memory_space<vmem>>, %arg9: memref<1x16x32xf32, #tpu.memory_space<vmem>>, %arg10: memref<2x24x32xf32, #tpu.memory_space<vmem>>) attributes {dimension_semantics = [#tpu.dimension_semantics<parallel>], iteration_bounds = array<i64: 2>, scalar_prefetch = 0 : i64, scratch_operands = 1 : i64, tpu.core_type = #tpu.core_type<tc>, window_params = [{transform_indices = @transform_0, window_bounds = array<i64: 1, 16, 32>}, {transform_indices = @transform_1, window_bounds = array<i64: 1, 16, 32>}, {pipeline_mode = #tpu.pipeline_mode<synchronous>, transform_indices = @transform_2, window_bounds = array<i64: 5, 64>}, {pipeline_mode = #tpu.pipeline_mode<synchronous>, transform_indices = @transform_3, window_bounds = array<i64: 64, 32>}, {pipeline_mode = #tpu.pipeline_mode<synchronous>, transform_indices = @transform_4, window_bounds = array<i64: 1, 32>}, {pipeline_mode = #tpu.pipeline_mode<synchronous>, transform_indices = @transform_5, window_bounds = array<i64: 1, 32>}, {pipeline_mode = #tpu.pipeline_mode<synchronous>, transform_indices = @transform_6, window_bounds = array<i64: 1, 32>}, {transform_indices = @transform_7, window_bounds = array<i64: 1, 16, 32>}, {transform_indices = @transform_8, window_bounds = array<i64: 1, 16, 32>}]} {
    %cst = arith.constant 0.000000e+00 : f32
    %0 = vector.broadcast %cst : f32 to vector<4x32xf32>
    %c0 = arith.constant 0 : index
    %c0_0 = arith.constant 0 : index
    %c0_1 = arith.constant 0 : index
    %1 = vector.load %arg10[%c0, %c0_0, %c0_1] : memref<2x24x32xf32, #tpu.memory_space<vmem>>, vector<1x4x32xf32>
    %2 = vector.shape_cast %1 : vector<1x4x32xf32> to vector<4x32xf32>
    %3 = vector.shape_cast %0 : vector<4x32xf32> to vector<1x4x32xf32>
    tpu.vector_store %arg10[%c0, %c0_0, %c0_1], %3 {strides = array<i32>} : memref<2x24x32xf32, #tpu.memory_space<vmem>>, vector<1x4x32xf32>,
    %c0_2 = arith.constant 0 : index
    %c20 = arith.constant 20 : index
    %c0_3 = arith.constant 0 : index
    %4 = vector.load %arg10[%c0_2, %c20, %c0_3] : memref<2x24x32xf32, #tpu.memory_space<vmem>>, vector<1x4x32xf32>
    %5 = vector.shape_cast %4 : vector<1x4x32xf32> to vector<4x32xf32>
    %6 = vector.shape_cast %0 : vector<4x32xf32> to vector<1x4x32xf32>
    tpu.vector_store %arg10[%c0_2, %c20, %c0_3], %6 {strides = array<i32>} : memref<2x24x32xf32, #tpu.memory_space<vmem>>, vector<1x4x32xf32>,
    %c0_4 = arith.constant 0 : index
    %c0_5 = arith.constant 0 : index
    %c0_6 = arith.constant 0 : index
    %7 = vector.load %arg1[%c0_4, %c0_5, %c0_6] : memref<1x16x32xf32, #tpu.memory_space<vmem>>, vector<1x16x32xf32>
    %8 = vector.shape_cast %7 : vector<1x16x32xf32> to vector<16x32xf32>
    %c0_7 = arith.constant 0 : index
    %c4 = arith.constant 4 : index
    %c0_8 = arith.constant 0 : index
    %9 = vector.load %arg10[%c0_7, %c4, %c0_8] : memref<2x24x32xf32, #tpu.memory_space<vmem>>, vector<1x16x32xf32>
    %10 = vector.shape_cast %9 : vector<1x16x32xf32> to vector<16x32xf32>
    %11 = vector.shape_cast %8 : vector<16x32xf32> to vector<1x16x32xf32>
    tpu.vector_store %arg10[%c0_7, %c4, %c0_8], %11 {strides = array<i32>} : memref<2x24x32xf32, #tpu.memory_space<vmem>>, vector<1x16x32xf32>,
    %cst_9 = arith.constant 0.000000e+00 : f32
    %12 = vector.broadcast %cst_9 : f32 to vector<4x32xf32>
    %c1 = arith.constant 1 : index
    %c0_10 = arith.constant 0 : index
    %c0_11 = arith.constant 0 : index
    %13 = vector.load %arg10[%c1, %c0_10, %c0_11] : memref<2x24x32xf32, #tpu.memory_space<vmem>>, vector<1x4x32xf32>
    %14 = vector.shape_cast %13 : vector<1x4x32xf32> to vector<4x32xf32>
    %15 = vector.shape_cast %12 : vector<4x32xf32> to vector<1x4x32xf32>
    tpu.vector_store %arg10[%c1, %c0_10, %c0_11], %15 {strides = array<i32>} : memref<2x24x32xf32, #tpu.memory_space<vmem>>, vector<1x4x32xf32>,
    %c1_12 = arith.constant 1 : index
    %c20_13 = arith.constant 20 : index
    %c0_14 = arith.constant 0 : index
    %16 = vector.load %arg10[%c1_12, %c20_13, %c0_14] : memref<2x24x32xf32, #tpu.memory_space<vmem>>, vector<1x4x32xf32>
    %17 = vector.shape_cast %16 : vector<1x4x32xf32> to vector<4x32xf32>
    %18 = vector.shape_cast %12 : vector<4x32xf32> to vector<1x4x32xf32>
    tpu.vector_store %arg10[%c1_12, %c20_13, %c0_14], %18 {strides = array<i32>} : memref<2x24x32xf32, #tpu.memory_space<vmem>>, vector<1x4x32xf32>,
    %c0_15 = arith.constant 0 : index
    %c0_16 = arith.constant 0 : index
    %c0_17 = arith.constant 0 : index
    %19 = vector.load %arg2[%c0_15, %c0_16, %c0_17] : memref<1x16x32xf32, #tpu.memory_space<vmem>>, vector<1x16x32xf32>
    %20 = vector.shape_cast %19 : vector<1x16x32xf32> to vector<16x32xf32>
    %c1_18 = arith.constant 1 : index
    %c4_19 = arith.constant 4 : index
    %c0_20 = arith.constant 0 : index
    %21 = vector.load %arg10[%c1_18, %c4_19, %c0_20] : memref<2x24x32xf32, #tpu.memory_space<vmem>>, vector<1x16x32xf32>
    %22 = vector.shape_cast %21 : vector<1x16x32xf32> to vector<16x32xf32>
    %23 = vector.shape_cast %20 : vector<16x32xf32> to vector<1x16x32xf32>
    tpu.vector_store %arg10[%c1_18, %c4_19, %c0_20], %23 {strides = array<i32>} : memref<2x24x32xf32, #tpu.memory_space<vmem>>, vector<1x16x32xf32>,
    %c0_21 = arith.constant 0 : index
    %c0_22 = arith.constant 0 : index
    %24 = vector.load %arg3[%c0_21, %c0_22] : memref<5x64xf32, #tpu.memory_space<vmem>>, vector<5x64xf32>
    %25 = vector.extract_strided_slice %24 {offsets = [0, 0], sizes = [5, 32], strides = [1, 1]} : vector<5x64xf32> to vector<5x32xf32>
    %c0_23 = arith.constant 0 : index
    %c0_24 = arith.constant 0 : index
    %c0_25 = arith.constant 0 : index
    %26 = vector.load %arg10[%c0_23, %c0_24, %c0_25] : memref<2x24x32xf32, #tpu.memory_space<vmem>>, vector<1x16x32xf32>
    %27 = vector.shape_cast %26 : vector<1x16x32xf32> to vector<16x32xf32>
    %28 = vector.extract_strided_slice %25 {offsets = [0, 0], sizes = [1, 32], strides = [1, 1]} : vector<5x32xf32> to vector<1x32xf32>
    %29 = vector.broadcast %28 : vector<1x32xf32> to vector<16x32xf32>
    %30 = arith.mulf %27, %29 : vector<16x32xf32>
    %c0_26 = arith.constant 0 : index
    %c2 = arith.constant 2 : index
    %c0_27 = arith.constant 0 : index
    %31 = vector.load %arg10[%c0_26, %c2, %c0_27] : memref<2x24x32xf32, #tpu.memory_space<vmem>>, vector<1x16x32xf32>
    %32 = vector.shape_cast %31 : vector<1x16x32xf32> to vector<16x32xf32>
    %33 = vector.extract_strided_slice %25 {offsets = [1, 0], sizes = [1, 32], strides = [1, 1]} : vector<5x32xf32> to vector<1x32xf32>
    %34 = vector.broadcast %33 : vector<1x32xf32> to vector<16x32xf32>
    %35 = arith.mulf %32, %34 : vector<16x32xf32>
    %36 = arith.addf %30, %35 : vector<16x32xf32>
    %c0_28 = arith.constant 0 : index
    %c4_29 = arith.constant 4 : index
    %c0_30 = arith.constant 0 : index
    %37 = vector.load %arg10[%c0_28, %c4_29, %c0_30] : memref<2x24x32xf32, #tpu.memory_space<vmem>>, vector<1x16x32xf32>
    %38 = vector.shape_cast %37 : vector<1x16x32xf32> to vector<16x32xf32>
    %39 = vector.extract_strided_slice %25 {offsets = [2, 0], sizes = [1, 32], strides = [1, 1]} : vector<5x32xf32> to vector<1x32xf32>
    %40 = vector.broadcast %39 : vector<1x32xf32> to vector<16x32xf32>
    %41 = arith.mulf %38, %40 : vector<16x32xf32>
    %42 = arith.addf %36, %41 : vector<16x32xf32>
    %c0_31 = arith.constant 0 : index
    %c6 = arith.constant 6 : index
    %c0_32 = arith.constant 0 : index
    %43 = vector.load %arg10[%c0_31, %c6, %c0_32] : memref<2x24x32xf32, #tpu.memory_space<vmem>>, vector<1x16x32xf32>
    %44 = vector.shape_cast %43 : vector<1x16x32xf32> to vector<16x32xf32>
    %45 = vector.extract_strided_slice %25 {offsets = [3, 0], sizes = [1, 32], strides = [1, 1]} : vector<5x32xf32> to vector<1x32xf32>
    %46 = vector.broadcast %45 : vector<1x32xf32> to vector<16x32xf32>
    %47 = arith.mulf %44, %46 : vector<16x32xf32>
    %48 = arith.addf %42, %47 : vector<16x32xf32>
    %c0_33 = arith.constant 0 : index
    %c8 = arith.constant 8 : index
    %c0_34 = arith.constant 0 : index
    %49 = vector.load %arg10[%c0_33, %c8, %c0_34] : memref<2x24x32xf32, #tpu.memory_space<vmem>>, vector<1x16x32xf32>
    %50 = vector.shape_cast %49 : vector<1x16x32xf32> to vector<16x32xf32>
    %51 = vector.extract_strided_slice %25 {offsets = [4, 0], sizes = [1, 32], strides = [1, 1]} : vector<5x32xf32> to vector<1x32xf32>
    %52 = vector.broadcast %51 : vector<1x32xf32> to vector<16x32xf32>
    %53 = arith.mulf %50, %52 : vector<16x32xf32>
    %54 = arith.addf %48, %53 : vector<16x32xf32>
    %c0_35 = arith.constant 0 : index
    %c0_36 = arith.constant 0 : index
    %55 = vector.load %arg4[%c0_35, %c0_36] : memref<64x32xf32, #tpu.memory_space<vmem>>, vector<32x32xf32>
    %cst_37 = arith.constant dense<0.000000e+00> : vector<16x32xf32>
    %56 = tpu.matmul %54, %55, %cst_37 {dimension_numbers = #tpu.dot_dimension_numbers<[1], [0], [0], [1], [0, 0, 1, 1], [], []>} : vector<16x32xf32>, vector<32x32xf32>, vector<16x32xf32> -> vector<16x32xf32>
    %57 = vector.extract_strided_slice %24 {offsets = [0, 32], sizes = [5, 32], strides = [1, 1]} : vector<5x64xf32> to vector<5x32xf32>
    %c1_38 = arith.constant 1 : index
    %c0_39 = arith.constant 0 : index
    %c0_40 = arith.constant 0 : index
    %58 = vector.load %arg10[%c1_38, %c0_39, %c0_40] : memref<2x24x32xf32, #tpu.memory_space<vmem>>, vector<1x16x32xf32>
    %59 = vector.shape_cast %58 : vector<1x16x32xf32> to vector<16x32xf32>
    %60 = vector.extract_strided_slice %57 {offsets = [0, 0], sizes = [1, 32], strides = [1, 1]} : vector<5x32xf32> to vector<1x32xf32>
    %61 = vector.broadcast %60 : vector<1x32xf32> to vector<16x32xf32>
    %62 = arith.mulf %59, %61 : vector<16x32xf32>
    %c1_41 = arith.constant 1 : index
    %c2_42 = arith.constant 2 : index
    %c0_43 = arith.constant 0 : index
    %63 = vector.load %arg10[%c1_41, %c2_42, %c0_43] : memref<2x24x32xf32, #tpu.memory_space<vmem>>, vector<1x16x32xf32>
    %64 = vector.shape_cast %63 : vector<1x16x32xf32> to vector<16x32xf32>
    %65 = vector.extract_strided_slice %57 {offsets = [1, 0], sizes = [1, 32], strides = [1, 1]} : vector<5x32xf32> to vector<1x32xf32>
    %66 = vector.broadcast %65 : vector<1x32xf32> to vector<16x32xf32>
    %67 = arith.mulf %64, %66 : vector<16x32xf32>
    %68 = arith.addf %62, %67 : vector<16x32xf32>
    %c1_44 = arith.constant 1 : index
    %c4_45 = arith.constant 4 : index
    %c0_46 = arith.constant 0 : index
    %69 = vector.load %arg10[%c1_44, %c4_45, %c0_46] : memref<2x24x32xf32, #tpu.memory_space<vmem>>, vector<1x16x32xf32>
    %70 = vector.shape_cast %69 : vector<1x16x32xf32> to vector<16x32xf32>
    %71 = vector.extract_strided_slice %57 {offsets = [2, 0], sizes = [1, 32], strides = [1, 1]} : vector<5x32xf32> to vector<1x32xf32>
    %72 = vector.broadcast %71 : vector<1x32xf32> to vector<16x32xf32>
    %73 = arith.mulf %70, %72 : vector<16x32xf32>
    %74 = arith.addf %68, %73 : vector<16x32xf32>
    %c1_47 = arith.constant 1 : index
    %c6_48 = arith.constant 6 : index
    %c0_49 = arith.constant 0 : index
    %75 = vector.load %arg10[%c1_47, %c6_48, %c0_49] : memref<2x24x32xf32, #tpu.memory_space<vmem>>, vector<1x16x32xf32>
    %76 = vector.shape_cast %75 : vector<1x16x32xf32> to vector<16x32xf32>
    %77 = vector.extract_strided_slice %57 {offsets = [3, 0], sizes = [1, 32], strides = [1, 1]} : vector<5x32xf32> to vector<1x32xf32>
    %78 = vector.broadcast %77 : vector<1x32xf32> to vector<16x32xf32>
    %79 = arith.mulf %76, %78 : vector<16x32xf32>
    %80 = arith.addf %74, %79 : vector<16x32xf32>
    %c1_50 = arith.constant 1 : index
    %c8_51 = arith.constant 8 : index
    %c0_52 = arith.constant 0 : index
    %81 = vector.load %arg10[%c1_50, %c8_51, %c0_52] : memref<2x24x32xf32, #tpu.memory_space<vmem>>, vector<1x16x32xf32>
    %82 = vector.shape_cast %81 : vector<1x16x32xf32> to vector<16x32xf32>
    %83 = vector.extract_strided_slice %57 {offsets = [4, 0], sizes = [1, 32], strides = [1, 1]} : vector<5x32xf32> to vector<1x32xf32>
    %84 = vector.broadcast %83 : vector<1x32xf32> to vector<16x32xf32>
    %85 = arith.mulf %82, %84 : vector<16x32xf32>
    %86 = arith.addf %80, %85 : vector<16x32xf32>
    %c32 = arith.constant 32 : index
    %c0_53 = arith.constant 0 : index
    %87 = vector.load %arg4[%c32, %c0_53] : memref<64x32xf32, #tpu.memory_space<vmem>>, vector<32x32xf32>
    %cst_54 = arith.constant dense<0.000000e+00> : vector<16x32xf32>
    %88 = tpu.matmul %86, %87, %cst_54 {dimension_numbers = #tpu.dot_dimension_numbers<[1], [0], [0], [1], [0, 0, 1, 1], [], []>} : vector<16x32xf32>, vector<32x32xf32>, vector<16x32xf32> -> vector<16x32xf32>
    %89 = arith.addf %56, %88 : vector<16x32xf32>
    %cst_55 = arith.constant dense<0.000000e+00> : vector<32xf32>
    %90 = vector.multi_reduction <add>, %89, %cst_55 [0] : vector<16x32xf32> to vector<32xf32>
    %91 = vector.shape_cast %90 : vector<32xf32> to vector<1x32xf32>
    %cst_56 = arith.constant 6.250000e-02 : f32
    %92 = vector.broadcast %cst_56 : f32 to vector<1x32xf32>
    %93 = arith.mulf %91, %92 : vector<1x32xf32>
    %94 = arith.mulf %89, %89 : vector<16x32xf32>
    %cst_57 = arith.constant dense<0.000000e+00> : vector<32xf32>
    %95 = vector.multi_reduction <add>, %94, %cst_57 [0] : vector<16x32xf32> to vector<32xf32>
    %96 = vector.shape_cast %95 : vector<32xf32> to vector<1x32xf32>
    %cst_58 = arith.constant 6.250000e-02 : f32
    %97 = vector.broadcast %cst_58 : f32 to vector<1x32xf32>
    %98 = arith.mulf %96, %97 : vector<1x32xf32>
    %99 = arith.mulf %93, %93 : vector<1x32xf32>
    %100 = arith.subf %98, %99 : vector<1x32xf32>
    %101 = vector.broadcast %93 : vector<1x32xf32> to vector<16x32xf32>
    %102 = arith.subf %89, %101 : vector<16x32xf32>
    %cst_59 = arith.constant 9.99999974E-6 : f32
    %103 = vector.broadcast %cst_59 : f32 to vector<1x32xf32>
    %104 = arith.addf %100, %103 : vector<1x32xf32>
    %105 = math.rsqrt %104 : vector<1x32xf32>
    %106 = vector.broadcast %105 : vector<1x32xf32> to vector<16x32xf32>
    %107 = arith.mulf %102, %106 : vector<16x32xf32>
    %c0_60 = arith.constant 0 : index
    %c0_61 = arith.constant 0 : index
    %108 = vector.load %arg5[%c0_60, %c0_61] : memref<1x32xf32, #tpu.memory_space<vmem>>, vector<1x32xf32>
    %109 = vector.broadcast %108 : vector<1x32xf32> to vector<16x32xf32>
    %110 = arith.mulf %107, %109 : vector<16x32xf32>
    %c0_62 = arith.constant 0 : index
    %c0_63 = arith.constant 0 : index
    %111 = vector.load %arg6[%c0_62, %c0_63] : memref<1x32xf32, #tpu.memory_space<vmem>>, vector<1x32xf32>
    %112 = vector.broadcast %111 : vector<1x32xf32> to vector<16x32xf32>
    %113 = arith.addf %110, %112 : vector<16x32xf32>
    %cst_64 = arith.constant 0.000000e+00 : f32
    %114 = vector.broadcast %cst_64 : f32 to vector<16x32xf32>
    %115 = arith.cmpf oge, %113, %114 : vector<16x32xf32>
    %c0_65 = arith.constant 0 : index
    %c0_66 = arith.constant 0 : index
    %116 = vector.load %arg7[%c0_65, %c0_66] : memref<1x32xf32, #tpu.memory_space<vmem>>, vector<1x32xf32>
    %117 = vector.broadcast %116 : vector<1x32xf32> to vector<16x32xf32>
    %118 = arith.mulf %117, %113 : vector<16x32xf32>
    %119 = arith.select %115, %113, %118 : vector<16x32xi1>, vector<16x32xf32>
    %c0_67 = arith.constant 0 : index
    %c0_68 = arith.constant 0 : index
    %c0_69 = arith.constant 0 : index
    %120 = vector.load %arg8[%c0_67, %c0_68, %c0_69] : memref<1x16x32xf32, #tpu.memory_space<vmem>>, vector<1x16x32xf32>
    %121 = vector.shape_cast %120 : vector<1x16x32xf32> to vector<16x32xf32>
    %122 = arith.addf %119, %121 : vector<16x32xf32>
    %c0_70 = arith.constant 0 : index
    %c0_71 = arith.constant 0 : index
    %c0_72 = arith.constant 0 : index
    %123 = vector.load %arg9[%c0_70, %c0_71, %c0_72] : memref<1x16x32xf32, #tpu.memory_space<vmem>>, vector<1x16x32xf32>
    %124 = vector.shape_cast %123 : vector<1x16x32xf32> to vector<16x32xf32>
    %125 = vector.shape_cast %122 : vector<16x32xf32> to vector<1x16x32xf32>
    tpu.vector_store %arg9[%c0_70, %c0_71, %c0_72], %125 {strides = array<i32>} : memref<1x16x32xf32, #tpu.memory_space<vmem>>, vector<1x16x32xf32>,
    return
  }
  func.func @transform_0(%arg0: i32) -> (i32, i32, i32) {
    %c0_i32 = arith.constant 0 : i32
    %c0_i32_0 = arith.constant 0 : i32
    %c0_i32_1 = arith.constant 0 : i32
    return %arg0, %c0_i32, %c0_i32_0 : i32, i32, i32
  }
  func.func @transform_1(%arg0: i32) -> (i32, i32, i32) {
    %c0_i32 = arith.constant 0 : i32
    %c0_i32_0 = arith.constant 0 : i32
    %c0_i32_1 = arith.constant 0 : i32
    return %arg0, %c0_i32, %c0_i32_0 : i32, i32, i32
  }
  func.func @transform_2(%arg0: i32) -> (i32, i32) {
    %c0_i32 = arith.constant 0 : i32
    %c0_i32_0 = arith.constant 0 : i32
    %c0_i32_1 = arith.constant 0 : i32
    return %c0_i32, %c0_i32_0 : i32, i32
  }
  func.func @transform_3(%arg0: i32) -> (i32, i32) {
    %c0_i32 = arith.constant 0 : i32
    %c0_i32_0 = arith.constant 0 : i32
    %c0_i32_1 = arith.constant 0 : i32
    return %c0_i32, %c0_i32_0 : i32, i32
  }
  func.func @transform_4(%arg0: i32) -> (i32, i32) {
    %c0_i32 = arith.constant 0 : i32
    %c0_i32_0 = arith.constant 0 : i32
    %c0_i32_1 = arith.constant 0 : i32
    return %c0_i32, %c0_i32_0 : i32, i32
  }
  func.func @transform_5(%arg0: i32) -> (i32, i32) {
    %c0_i32 = arith.constant 0 : i32
    %c0_i32_0 = arith.constant 0 : i32
    %c0_i32_1 = arith.constant 0 : i32
    return %c0_i32, %c0_i32_0 : i32, i32
  }
  func.func @transform_6(%arg0: i32) -> (i32, i32) {
    %c0_i32 = arith.constant 0 : i32
    %c0_i32_0 = arith.constant 0 : i32
    %c0_i32_1 = arith.constant 0 : i32
    return %c0_i32, %c0_i32_0 : i32, i32
  }
  func.func @transform_7(%arg0: i32) -> (i32, i32, i32) {
    %c0_i32 = arith.constant 0 : i32
    %c0_i32_0 = arith.constant 0 : i32
    %c0_i32_1 = arith.constant 0 : i32
    return %arg0, %c0_i32, %c0_i32_0 : i32, i32, i32
  }
  func.func @transform_8(%arg0: i32) -> (i32, i32, i32) {
    %c0_i32 = arith.constant 0 : i32
    %c0_i32_0 = arith.constant 0 : i32
    %c0_i32_1 = arith.constant 0 : i32
    return %arg0, %c0_i32, %c0_i32_0 : i32, i32, i32
  }
}

</mosaic_0001>

<bundles_post_ra>
// kernel: uni_deep_fsmn_dilated.3
= control target key start
LH: loop header
LB: loop body
LE: loop exit
PB: predicated region body
PF: predicated region fallthrough
CT: control target
= control target key end

     0   :  { %vm32_vm0 = vcmask 261120   ;;  %vm142_vm1 = vcmask 523264   ;;  %s433_s1 = inlined_call_operand.vmem [shape: f32[32,64], index: 1, kind: input, shape index: {}]   ;;  %s434_s0 = inlined_call_operand.vmem [shape: f32[32,32], index: 0, kind: input, shape index: {}]   ;;  %s435_s3 = inlined_call_operand.vmem [shape: f32[64,32], index: 3, kind: input, shape index: {}]   ;;  %s436_s2 = inlined_call_operand.vmem [shape: f32[1,64], index: 2, kind: input, shape index: {}]   ;;  %s437_s4 = inlined_call_operand.vmem [shape: f32[32,32], index: 4, kind: output, shape index: {}]  }
   0x1   :  { %v21_v0 = vld [vmem:[%s433_s1] sm:$0xff]  ;;  %v22_v1 = vld [vmem:[%s433_s1 + $0x8] sm:$0xff]  ;;  %v23_v2 = vld [vmem:[%s433_s1 + $0x10] sm:$0xff] }
   0x2   :  { %v313_v3 = vpack.c.bf16 %v22_v1, %v21_v0  ;;  %v24_v4 = vld [vmem:[%s433_s1 + $0x18] sm:$0xff]  ;;  %v17_v5 = vld [vmem:[%s434_s0] sm:$0xff]  ;;  %v135_v8 = vld [vmem:[%s435_s3 + $0x8] sm:$0xff] }
   0x3   :  { %v317_v6 = vpack.c.bf16 %v24_v4, %v23_v2  ;;  %285 = vmatprep.mubr.msk.f32.mxu0 %vm32_vm0, %v17_v5  ;;  %v134_v7 = vld [vmem:[%s435_s3] sm:$0xff]  ;;  %v136_v9 = vld [vmem:[%s435_s3 + $0x10] sm:$0xff]  ;;  %v137_v10 = vld [vmem:[%s435_s3 + $0x18] sm:$0xff] }
   0x4   :  { %314 = vmatprep.subr.bf16.mxu0 %v313_v3  ;;  %v321_v11 = vpack.c.bf16 %v135_v8, %v134_v7  ;;  %v325_v12 = vpack.c.bf16 %v137_v10, %v136_v9  ;;  %v138_v13 = vld [vmem:[%s435_s3 + $0x20] sm:$0xff]  ;;  %v139_v14 = vld [vmem:[%s435_s3 + $0x28] sm:$0xff]  ;;  %v19_v17 = vld [vmem:[%s434_s0 + $0x10] sm:$0xff] }
   0x5   :  { %316 = vmatpush3.bf16.msra.mxu0 %v313_v3  ;;  %v18_v15 = vld [vmem:[%s434_s0 + $0x8] sm:$0xff]  ;;  %v329_v16 = vpack.c.bf16 %v139_v14, %v138_v13  ;;  %v20_v18 = vld [vmem:[%s434_s0 + $0x18] sm:$0xff]  ;;  %v140_v19 = vld [vmem:[%s435_s3 + $0x30] sm:$0xff] }
   0x6   :  { %318 = vmatprep.subr.bf16.mxu0 %v317_v6  ;;  %322 = vmatprep.subr.bf16.mxu1 %v321_v11  ;;  %v141_v20 = vld [vmem:[%s435_s3 + $0x38] sm:$0xff]  ;;  %v248_v22 = vld [vmem:[%s436_s2] ss:$0 sm:$0xff] }
   0x7   :  { %324 = vmatpush3.bf16.msra.mxu1 %v321_v11  ;;  %v333_v21 = vpack.c.bf16 %v141_v20, %v140_v19 }
   0x8   :  { %326 = vmatprep.subr.bf16.mxu1 %v325_v12 }
   0x9   :  { %320 = vmatpush3.bf16.msra.mxu0 %v317_v6 }
   0xb   :  { %328 = vmatpush3.bf16.msra.mxu1 %v325_v12 }
   0xc   :  { %286 = vmatmul.mubr.msk.f32.vlgmr.msra.gmra.mrb[0].mxu0 %vm32_vm0, %v18_v15  ;;  %330 = vmatprep.subr.bf16.mxu1 %v329_v16 }
   0xd   :  { %288 = vmatprep.mubr.msk.f32.mxu0 %vm32_vm0, %v19_v17 }
   0xf   :  { %332 = vmatpush3.bf16.msra.mxu1 %v329_v16 }
  0x10   :  { %289 = vmatmul.mubr.msk.f32.gmra.mrb[2].mxu0 %vm32_vm0, %v20_v18  ;;  %334 = vmatprep.subr.bf16.mxu1 %v333_v21 }
  0x13   :  { %336 = vmatpush3.bf16.msra.mxu1 %v333_v21 }
  0xdf   :  { %v287_v23 = vpop.f32.mrb[0].mxu0 }
  0xe0   :  { %v117_v24 = vadd.f32 %v287_v23, %v248_v22  ;;  %v111_v25 = vpop.f32.mrb[1].mxu0 }
  0xe1   :  { %v112_v26 = vadd.f32 %v248_v22, %v111_v25 }
  0xe2   :  { %v131_v29 = vmax.f32 %v117_v24, 0.0 }
  0xe3   :  { %v130_v27 = vmax.f32 %v112_v26, 0.0  ;;  %v290_v28 = vpop.f32.mrb[2].mxu0 }
  0xe4   :  { %v127_v30 = vadd.f32 %v290_v28, %v248_v22  ;;  %v121_v31 = vpop.f32.mrb[3].mxu0 }
  0xe5   :  { %v122_v32 = vadd.f32 %v248_v22, %v121_v31  ;;  %307 = vmatprep.mubr.msk.f32.mxu1 %vm142_vm1, %v130_v27 }
  0xe6   :  { %308 = vmatmul.mubr.msk.f32.vlgmr.msra.gmra.mrb[0].mxu1 %vm142_vm1, %v131_v29  ;;  %v133_v34 = vmax.f32 %v127_v30, 0.0 }
  0xe7   :  { %v132_v33 = vmax.f32 %v122_v32, 0.0 }
  0xe9   :  { %310 = vmatprep.mubr.msk.f32.mxu1 %vm142_vm1, %v132_v33 }
  0xea   :  { %311 = vmatmul.mubr.msk.f32.gmra.mrb[2].mxu1 %vm142_vm1, %v133_v34 }
 0x1b9   :  { %v309_v35 = vpop.f32.mrb[0].mxu1 }
 0x1ba   :  { %241 = vst.msk [vmem:[%s437_s4 + $0x8] sm:$0xff] %vm32_vm0, %v309_v35  ;;  %v221_v36 = vpop.f32.mrb[1].mxu1 }
 0x1bb   :  { %240 = vst.msk [vmem:[%s437_s4] sm:$0xff] %vm32_vm0, %v221_v36 }
 0x1bd   :  { %v312_v37 = vpop.f32.mrb[2].mxu1 }
 0x1be   :  { %243 = vst.msk [vmem:[%s437_s4 + $0x18] sm:$0xff] %vm32_vm0, %v312_v37  ;;  %v231_v38 = vpop.f32.mrb[3].mxu1 }
 0x1bf   :  { %242 = vst.msk [vmem:[%s437_s4 + $0x10] sm:$0xff] %vm32_vm0, %v231_v38 }

// kernel: uni_deep_fsmn_dilated.4
= control target key start
LH: loop header
LB: loop body
LE: loop exit
PB: predicated region body
PF: predicated region fallthrough
CT: control target
= control target key end

     0   :  { %s466_s18 = smov 0   ;;  %s510_s0 = inlined_call_operand.vmem [shape: f32[2,16,32], index: 0, kind: input, shape index: {}]   ;;  %s511_s1 = inlined_call_operand.vmem [shape: f32[5,32], index: 1, kind: input, shape index: {}]   ;;  %s512_s2 = inlined_call_operand.vmem [shape: f32[1,32], index: 2, kind: input, shape index: {}]   ;;  %s513_s3 = inlined_call_operand.vmem [shape: f32[1,32], index: 3, kind: input, shape index: {}]   ;;  %s514_s4 = inlined_call_operand.vmem [shape: f32[1,32], index: 4, kind: input, shape index: {}]   ;;  %s515_s5 = inlined_call_operand.vmem [shape: f32[2,16,32], index: 5, kind: output, shape index: {}]  }
   0x1 LB: > { %s400_s19 = sadd.s32 4294967295, %s433_s18   ;;  %p404_p0 = scmp.ge.s32.totalorder %s433_s18, 1  ;;  %s433_s18 = sphi %s466_s18, %s15_s18  }
   0x2   : > { %p187_p1 = scmp.lt.s32.totalorder %s433_s18, 3 }
   0x4   : > { %p188_p2 = pnand %p404_p0, %p187_p1 }
   0x5   : > { %vm225_vm0 = vcmask (!%p188_p2), 254976   ;;  %p215_p3 = scmp.lt.s32.totalorder (!%p188_p2), %s400_s19, 1  ;;  %v236_v0 = vlaneseq (!%p188_p2)  ;;  %v435_v1 = vmov (!%p188_p2), 0.0   ;;  %vm230_vm1 = vcmask (!%p188_p2), 261120   ;;  %v233_v7 = vld [vmem:[%s511_s1] sm:$0x1f] (!%p188_p2) }
   0x6   : > { %191 = sbr.rel (%p188_p2) target bundleno = 80 (0x50), region = 40  ;;  %226 = vst.msk [vmem:[#allocation2] sm:$0x3] (!%p188_p2), %vm225_vm0, %v435_v1  ;;  %227 = vst.msk [vmem:[#allocation2 + $0x12] sm:$0x3] (!%p188_p2), %vm225_vm0, %v435_v1 }
   0x7   : > { %v237_v2 = vshrl.u32 (!%p188_p2), %v236_v0, 7 }
   0x9   : > { %v238_v5 = vsub.s32 (!%p188_p2), 0, %v237_v2  ;;  %v246_v6 = vsub.s32 (!%p188_p2), 1, %v237_v2  ;;  %v256_v8 = vsub.s32 (!%p188_p2), 2, %v237_v2  ;;  %v266_v11 = vsub.s32 (!%p188_p2), 3, %v237_v2 }
   0xa   : > { %v276_v13 = vsub.s32 (!%p188_p2), 4, %v237_v2 }
   0xb   : > { %v239_v9 = vrot.slane (!%p188_p2), %v233_v7, %v238_v5  ;;  %v247_v10 = vrot.slane (!%p188_p2), %v233_v7, %v246_v6  ;;  %v257_v12 = vrot.slane (!%p188_p2), %v233_v7, %v256_v8  ;;  %v267_v23 = vrot.slane (!%p188_p2), %v233_v7, %v266_v11  ;;  %v409_v8 = vld [vmem:[%s512_s2] ss:$0 sm:$0xff] (!%p188_p2) }
   0xc   : > { %v277_v29 = vrot.slane (!%p188_p2), %v233_v7, %v276_v13  ;;  %v410_v11 = vld [vmem:[%s513_s3] ss:$0 sm:$0xff] (!%p188_p2) }
   0xd   : > { %s517_s19 = smov (!%p215_p3, %s400_s19), 1 }
   0xe   : > { %s414_s20 = sshll.u32 %s517_s19, 4 }
   0xf   : > { %s219_s23 = scalar_lea.vmem %s510_s0, %s414_s20  ;;  %s224_s9 = scalar_lea.vmem %s515_s5, %s414_s20 }
  0x10   : > { %v228_v3 = vld [vmem:[%s219_s23] sm:$0xff]  ;;  %v229_v4 = vld [vmem:[%s219_s23 + $0x8] sm:$0xff] }
  0x11   : > { %231 = vst.msk [vmem:[#allocation2 + $0x2] sm:$0xff] %vm230_vm1, %v228_v3  ;;  %232 = vst.msk [vmem:[#allocation2 + $0xa] sm:$0xff] %vm230_vm1, %v229_v4 }
  0x18   : > { %v234_v14 = vld [vmem:[#allocation2] sm:$0xff]  ;;  %v235_v15 = vld [vmem:[#allocation2 + $0x8] sm:$0xff] }
  0x19   : > { %v242_v16 = vld [vmem:[#allocation2 + $0x1] sm:$0xff]  ;;  %v240_v17 = vmul.f32 %v239_v9, %v234_v14  ;;  %v241_v18 = vmul.f32 %v239_v9, %v235_v15  ;;  %v243_v19 = vld [vmem:[#allocation2 + $0x9] sm:$0xff]  ;;  %v411_v14 = vld [vmem:[%s514_s4] ss:$0 sm:$0xff] }
  0x1a   : > { %v248_v20 = vmul.f32 %v247_v10, %v242_v16  ;;  %v252_v21 = vld [vmem:[#allocation2 + $0x2] sm:$0xff]  ;;  %v253_v22 = vld [vmem:[#allocation2 + $0xa] sm:$0xff]  ;;  %v249_v24 = vmul.f32 %v247_v10, %v243_v19 }
  0x1b   : > { %v262_v25 = vld [vmem:[#allocation2 + $0x3] sm:$0xff]  ;;  %v258_v27 = vmul.f32 %v257_v12, %v252_v21  ;;  %v263_v28 = vld [vmem:[#allocation2 + $0xb] sm:$0xff]  ;;  %v259_v31 = vmul.f32 %v257_v12, %v253_v22 }
  0x1c   : > { %v250_v26 = vadd.f32 %v248_v20, %v240_v17  ;;  %v251_v30 = vadd.f32 %v249_v24, %v241_v18  ;;  %v272_v32 = vld [vmem:[#allocation2 + $0x4] sm:$0xff]  ;;  %v268_v34 = vmul.f32 %v267_v23, %v262_v25  ;;  %v273_v35 = vld [vmem:[#allocation2 + $0xc] sm:$0xff]  ;;  %v269_v37 = vmul.f32 %v267_v23, %v263_v28 }
  0x1d   : > { %v278_v39 = vmul.f32 %v277_v29, %v272_v32  ;;  %v279_v41 = vmul.f32 %v277_v29, %v273_v35 }
  0x1e   : > { %v260_v33 = vadd.f32 %v258_v27, %v250_v26  ;;  %v261_v36 = vadd.f32 %v259_v31, %v251_v30 }
  0x20   : > { %v270_v38 = vadd.f32 %v268_v34, %v260_v33  ;;  %v271_v40 = vadd.f32 %v269_v37, %v261_v36 }
  0x22   : > { %v280_v42 = vadd.f32 %v278_v39, %v270_v38  ;;  %v281_v43 = vadd.f32 %v279_v41, %v271_v40 }
  0x24   : > { %v282_v44 = vsel %vm230_vm1, %v280_v42, 0.0  ;;  %v292_v45 = vmul.f32 %v280_v42, %v280_v42  ;;  %v283_v46 = vsel %vm230_vm1, %v281_v43, 0.0  ;;  %v293_v47 = vmul.f32 %v281_v43, %v281_v43 }
  0x25   : > { %v284_v48 = vadd.f32 %v283_v46, %v282_v44 }
  0x26   : > { %v294_v49 = vsel %vm230_vm1, %v292_v45, 0.0  ;;  %v295_v50 = vsel %vm230_vm1, %v293_v47, 0.0 }
  0x27   : > { %v285_v51 = vrot.slane %v284_v48, 4  ;;  %v296_v52 = vadd.f32 %v295_v50, %v294_v49 }
  0x29   : > { %v286_v53 = vadd.f32 %v285_v51, %v284_v48  ;;  %v297_v54 = vrot.slane %v296_v52, 4 }
  0x2b   : > { %v287_v55 = vrot.slane %v286_v53, 2  ;;  %v298_v56 = vadd.f32 %v297_v54, %v296_v52 }
  0x2d   : > { %v288_v57 = vadd.f32 %v287_v55, %v286_v53  ;;  %v299_v58 = vrot.slane %v298_v56, 2 }
  0x2f   : > { %v289_v59 = vrot.slane %v288_v57, 1  ;;  %v300_v60 = vadd.f32 %v299_v58, %v298_v56 }
  0x31   : > { %v290_v61 = vadd.f32 %v289_v59, %v288_v57  ;;  %v301_v62 = vrot.slane %v300_v60, 1 }
  0x33   : > { %v291_v63 = vmul.f32 0.0625, %v290_v61  ;;  %v302_v0 = vadd.f32 %v301_v62, %v300_v60 }
  0x35   : > { %v303_v1 = vmul.f32 0.0625, %v302_v0  ;;  %v304_v2 = vmul.f32 %v291_v63, %v291_v63  ;;  %v306_v5 = vsub.f32 %v280_v42, %v291_v63  ;;  %v307_v6 = vsub.f32 %v281_v43, %v291_v63 }
  0x37   : > { %v305_v3 = vsub.f32 %v303_v1, %v304_v2 }
  0x39   : > { %v308_v4 = vadd.f32 1e-05, %v305_v3 }
  0x3b   : > { %425 = vrsqrt.f32 %v308_v4 }
  0x45   : > { %v426_v7 = vpop.eup %425 }
  0x46   : > { %v310_v9 = vmul.f32 %v426_v7, %v306_v5  ;;  %v311_v10 = vmul.f32 %v426_v7, %v307_v6 }
  0x48   : > { %v319_v12 = vmul.f32 %v409_v8, %v310_v9  ;;  %v320_v13 = vmul.f32 %v409_v8, %v311_v10 }
  0x4a   : > { %v328_v15 = vadd.f32 %v410_v11, %v319_v12  ;;  %v329_v16 = vadd.f32 %v410_v11, %v320_v13 }
  0x4c   : > { %vm330_vm2 = vcmp.ge.f32.partialorder %v328_v15, 0.0  ;;  %v339_v17 = vmul.f32 %v411_v14, %v328_v15  ;;  %vm331_vm3 = vcmp.ge.f32.partialorder %v329_v16, 0.0  ;;  %v340_v18 = vmul.f32 %v411_v14, %v329_v16 }
  0x4e   : > { %v341_v19 = vsel %vm330_vm2, %v328_v15, %v339_v17  ;;  %v342_v20 = vsel %vm331_vm3, %v329_v16, %v340_v18 }
  0x4f   : > { %343 = vst.msk [vmem:[%s224_s9] sm:$0xff] %vm230_vm1, %v341_v19  ;;  %344 = vst.msk [vmem:[%s224_s9 + $0x8] sm:$0xff] %vm230_vm1, %v342_v20 }
  0x50 PF: > { %s15_s18 = sadd.s32 1, %s433_s18  }
  0x51   : > { %p12_p4 = scmp.ge.s32.totalorder %s15_s18, 4  }
  0x53   :  { %14 = sbr.rel (!%p12_p4) target bundleno = 1 (0x1), region = 70 }

// kernel: uni_deep_fsmn_dilated.5
= control target key start
LH: loop header
LB: loop body
LE: loop exit
PB: predicated region body
PF: predicated region fallthrough
CT: control target
= control target key end

     0   :  { %13 = vsyncpa [#allocation4], 0  ;;  %s1197_s0 = inlined_call_operand.vmem [shape: f32[2,16,32], index: 0, kind: input, shape index: {}]   ;;  %s1198_s1 = inlined_call_operand.vmem [shape: f32[2,16,32], index: 1, kind: input, shape index: {}]   ;;  %s1199_s2 = inlined_call_operand.vmem [shape: f32[5,64], index: 2, kind: input, shape index: {}]   ;;  %s1200_s3 = inlined_call_operand.vmem [shape: f32[64,32], index: 3, kind: input, shape index: {}]   ;;  %s1201_s4 = inlined_call_operand.vmem [shape: f32[1,32], index: 4, kind: input, shape index: {}]   ;;  %s1202_s5 = inlined_call_operand.vmem [shape: f32[1,32], index: 5, kind: input, shape index: {}]   ;;  %s1203_s6 = inlined_call_operand.vmem [shape: f32[1,32], index: 6, kind: input, shape index: {}]   ;;  %s1204_s7 = inlined_call_operand.vmem [shape: f32[2,16,32], index: 7, kind: input, shape index: {}]   ;;  %s1205_s8 = inlined_call_operand.hbm [shape: f32[2,16,32], index: 8, kind: output, shape index: {}]  }
   0x1   :  { %15 = vsyncpa [#allocation4 + $0x1], 0  ;;  %s1029_s27 = smov 0   ;;  %s1031_s28 = smov 0  }
   0x2   :  { %s1033_s29 = smov 0   ;;  %s1035_s30 = smov 0  }
   0x3 LB: > { %s1050_s9 = sadd.s32 4294967295, %s977_s30   ;;  %s791_s10 = sadd.s32 4294967294, %s977_s30   ;;  %s977_s30 = sphi %s1035_s30, %s1211_s30   ;;  %s973_s29 = sphi %s1033_s29, %s1210_s29   ;;  %s969_s28 = sphi %s1031_s28, %s1209_s28   ;;  %s965_s27 = sphi %s1029_s27, %s1208_s27  }
   0x4   : > { %s1054_s11 = sadd.s32 1, %s977_s30   ;;  %s211_s12 = sadd.s32 1, %s973_s29 }
   0x5   : > { %s208_s13 = ssub.s32 %s977_s30, %s1054_s11  ;;  %p221_p0 = scmp.ne.s32.totalorder %s973_s29, %s969_s28 }
   0x6   : > { %p209_p1 = scmp.eq.s32.totalorder %s208_s13, 0  ;;  %p222_p2 = scmp.eq.s32.totalorder %s1050_s9, 1 }
   0x7   : > { %p227_p3 = scmp.ne.s32.totalorder %s969_s28, %s965_s27  ;;  %p228_p4 = scmp.eq.s32.totalorder %s791_s10, 1 }
   0x8   : > { %s1065_s14 = scalar_select %p209_p1, %s973_s29, %s211_s12  }
   0x9   : > { %p1067_p5 = por %p222_p2, %p221_p0  ;;  %p1071_p6 = por %p228_p4, %p227_p3 }
   0xa   : > { %p794_p7 = scmp.ge.s32.totalorder %s977_s30, 1  ;;  %p285_p8 = scmp.lt.s32.totalorder %s977_s30, 3 }
   0xc   : > { %p286_p9 = pnand %p794_p7, %p285_p8 }
   0xd   : > { %v362_v0 = vlaneseq (!%p286_p9)  ;;  %p329_p10 = scmp.lt.s32.totalorder (!%p286_p9), %s1050_s9, 1  ;;  %vm344_vm0 = vcmask (!%p286_p9), 257024   ;;  %v979_v1 = vmov (!%p286_p9), 0.0   ;;  %v407_v2 = vld [vmem:[%s1200_s3] sm:$0xff] (!%p286_p9)  ;;  %v408_v3 = vld [vmem:[%s1200_s3 + $0x8] sm:$0xff] (!%p286_p9)  ;;  %v409_v8 = vld [vmem:[%s1200_s3 + $0x10] sm:$0xff] (!%p286_p9) }
   0xe   : > { %289 = sbr.rel (%p286_p9) target bundleno = 429 (0x1ad), region = 52  ;;  %345 = vst.msk [vmem:[#allocation2] sm:$0xf] (!%p286_p9), %vm344_vm0, %v979_v1  ;;  %346 = vst.msk [vmem:[#allocation2 + $0x14] sm:$0xf] (!%p286_p9), %vm344_vm0, %v979_v1  ;;  %v458_v4 = vld [vmem:[%s1200_s3 + $0x20] sm:$0xff] (!%p286_p9)  ;;  %v860_v6 = vpack.c.bf16 (!%p286_p9), %v408_v3, %v407_v2 }
   0xf   : > { %353 = vst.msk [vmem:[#allocation2 + $0x18] sm:$0xf] (!%p286_p9), %vm344_vm0, %v979_v1  ;;  %354 = vst.msk [vmem:[#allocation2 + $0x2c] sm:$0xf] (!%p286_p9), %vm344_vm0, %v979_v1  ;;  %v363_v5 = vshrl.u32 (!%p286_p9), %v362_v0, 7  ;;  %v459_v7 = vld [vmem:[%s1200_s3 + $0x28] sm:$0xff] (!%p286_p9) }
  0x10   : > { %v410_v9 = vld [vmem:[%s1200_s3 + $0x18] sm:$0xff] (!%p286_p9)  ;;  %v359_v10 = vld [vmem:[%s1199_s2] sm:$0x1f] (!%p286_p9)  ;;  %vm349_vm1 = vcmask (!%p286_p9), 261120   ;;  %v852_v11 = vpack.c.bf16 (!%p286_p9), %v459_v7, %v458_v4  ;;  %v460_v13 = vld [vmem:[%s1200_s3 + $0x30] sm:$0xff] (!%p286_p9)  ;;  %861 = vmatprep.subr.bf16.mxu0 (!%p286_p9), %v860_v6  ;;  %s326_s18 = sand.u32 (!%p286_p9), 1, %s969_s28  }
  0x11   : > { %v864_v12 = vpack.c.bf16 (!%p286_p9), %v410_v9, %v409_v8  ;;  %v461_v14 = vld [vmem:[%s1200_s3 + $0x38] sm:$0xff] (!%p286_p9)  ;;  %v364_v15 = vsub.s32 (!%p286_p9), 0, %v363_v5  ;;  %v382_v16 = vsub.s32 (!%p286_p9), 2, %v363_v5  ;;  %v372_v17 = vsub.s32 (!%p286_p9), 1, %v363_v5  ;;  %863 = vmatpush3.bf16.msra.mxu0 (!%p286_p9), %v860_v6  ;;  %s795_s21 = sshll.u32 (!%p286_p9), %s326_s18, 4 }
  0x12   : > { %v392_v18 = vsub.s32 (!%p286_p9), 3, %v363_v5  ;;  %853 = vmatprep.subr.bf16.mxu1 (!%p286_p9), %v852_v11  ;;  %v856_v19 = vpack.c.bf16 (!%p286_p9), %v461_v14, %v460_v13  ;;  %v401_v28 = vsub.s32 (!%p286_p9), 4, %v363_v5  ;;  %s328_s19 = scalar_lea.vmem (!%p286_p9), [#allocation3], %s795_s21  ;;  %s981_s21 = smov (!%p286_p9), [#allocation3]  }
  0x13   : > { %v365_v20 = vrot.slane (!%p286_p9), %v359_v10, %v364_v15  ;;  %v383_v22 = vrot.slane (!%p286_p9), %v359_v10, %v382_v16  ;;  %855 = vmatpush3.bf16.msra.mxu1 (!%p286_p9), %v852_v11  ;;  %865 = vmatprep.subr.bf16.mxu0 (!%p286_p9), %v864_v12  ;;  %v373_v26 = vrot.slane (!%p286_p9), %v359_v10, %v372_v17  ;;  %s705_s20 = sshll.u32 (!%p286_p9), %s328_s19, 4  ;;  %s1150_s20 = int_to_ptr.vmem [resolvable:$true] %s705_s20 }
  0x14   : > { %857 = vmatprep.subr.bf16.mxu1 (!%p286_p9), %v856_v19  ;;  %v393_v27 = vrot.slane (!%p286_p9), %v359_v10, %v392_v18  ;;  %v402_v29 = vrot.slane (!%p286_p9), %v359_v10, %v401_v28 }
  0x15   : > { %s330_s23 = scalar_select %p329_p10, %s1050_s9, 1  ;;  %867 = vmatpush3.bf16.msra.mxu0 %v864_v12 }
  0x17   : > { %s1106_s24 = sshll.u32 %s330_s23, 4  ;;  %s980_s23 = smov 96   ;;  %859 = vmatpush3.bf16.msra.mxu1 %v856_v19 }
  0x18   : > { %s333_s10 = scalar_lea.vmem %s1197_s0, %s1106_s24  ;;  %s338_s17 = scalar_lea.vmem %s1198_s1, %s1106_s24  ;;  %414 = vrot.lane.b32.xlu0 %v365_v20, %s980_s23  ;;  %432 = vrot.lane.b32.xlu1 %v383_v22, %s980_s23 }
  0x19   : > { %v347_v21 = vld [vmem:[%s333_s10] sm:$0xff]  ;;  %v348_v23 = vld [vmem:[%s333_s10 + $0x8] sm:$0xff]  ;;  %s919_s10 = sshll.u32 %s981_s21, 4  ;;  %s920_s10 = int_to_ptr.vmem [resolvable:$false] %s919_s10 }
  0x1a   : > { %v355_v24 = vld [vmem:[%s338_s17] sm:$0xff]  ;;  %350 = vst.msk [vmem:[#allocation2 + $0x4] sm:$0xff] %vm349_vm1, %v347_v21  ;;  %351 = vst.msk [vmem:[#allocation2 + $0xc] sm:$0xff] %vm349_vm1, %v348_v23  ;;  %v356_v25 = vld [vmem:[%s338_s17 + $0x8] sm:$0xff]  ;;  %s343_s17 = scalar_lea.vmem %s1204_s7, %s1106_s24  ;;  %s915_s24 = scalar_lea.vmem %s1150_s20, 256 }
  0x1b   : > { %357 = vst.msk [vmem:[#allocation2 + $0x1c] sm:$0xff] %vm349_vm1, %v355_v24  ;;  %358 = vst.msk [vmem:[#allocation2 + $0x24] sm:$0xff] %vm349_vm1, %v356_v25  ;;  %p916_p11 = scmp.ne.s32.totalorder %s1150_s20, %s915_s24  ;;  %s921_s12 = scalar_lea.vmem %s920_s10, 512 }
  0x1c   : > { %422 = vrot.lane.b32.xlu0 %v373_v26, %s980_s23  ;;  %442 = vrot.lane.b32.xlu1 %v393_v27, %s980_s23  ;;  %p922_p0 = scmp.lt.s32.totalorder %s1150_s20, %s920_s10  ;;  %p923_p1 = scmp.lt.s32.totalorder %s921_s12, %s915_s24 }
  0x1d   : > { %p917_p12 = pnand %p916_p11, %p1067_p5 }
  0x1e   : > { %p924_p2 = por %p923_p1, %p922_p0 }
  0x1f   : > { %p918_p13 = pneg %p917_p12 }
  0x20   : > { %451 = vrot.lane.b32.xlu0 %v402_v29, %s980_s23  ;;  %s817_s23 = sshll.u32 %s1050_s9, 8  ;;  %s1156_s9 = scalar_lea.sflag [#allocation4], %s326_s18 }
  0x21   : > { %v360_v30 = vld [vmem:[#allocation2] sm:$0xff]  ;;  %v369_v33 = vld [vmem:[#allocation2 + $0xa] sm:$0xff]  ;;  %s1148_s26 = scalar_lea.hbm %s1205_s8, %s817_s23  ;;  %p925_p3 = pnand %p924_p2, %p918_p13 }
  0x22   : > { %v368_v31 = vld [vmem:[#allocation2 + $0x2] sm:$0xff]  ;;  %v366_v32 = vmul.f32 %v365_v20, %v360_v30  ;;  %v379_v35 = vld [vmem:[#allocation2 + $0xc] sm:$0xff]  ;;  %v375_v36 = vmul.f32 %v373_v26, %v369_v33  ;;  %v411_v59 = vld [vmem:[#allocation2 + $0x18] sm:$0xff] }
  0x23   : > { %v374_v34 = vmul.f32 %v373_v26, %v368_v31  ;;  %v389_v37 = vld [vmem:[#allocation2 + $0xe] sm:$0xff]  ;;  %v378_v40 = vld [vmem:[#allocation2 + $0x4] sm:$0xff]  ;;  %v385_v42 = vmul.f32 %v383_v22, %v379_v35  ;;  %v419_v60 = vld [vmem:[#allocation2 + $0x1a] sm:$0xff] }
  0x24   : > { %v361_v39 = vld [vmem:[#allocation2 + $0x8] sm:$0xff]  ;;  %v384_v44 = vmul.f32 %v383_v22, %v378_v40  ;;  %v398_v46 = vld [vmem:[#allocation2 + $0x10] sm:$0xff]  ;;  %v395_v47 = vmul.f32 %v393_v27, %v389_v37  ;;  %v412_v62 = vld [vmem:[#allocation2 + $0x20] sm:$0xff] }
  0x25   : > { %v376_v38 = vadd.f32 %v374_v34, %v366_v32  ;;  %v388_v41 = vld [vmem:[#allocation2 + $0x6] sm:$0xff]  ;;  %v367_v43 = vmul.f32 %v365_v20, %v361_v39  ;;  %v403_v50 = vmul.f32 %v402_v29, %v361_v39  ;;  %v404_v51 = vmul.f32 %v402_v29, %v398_v46  ;;  %v429_v63 = vld [vmem:[#allocation2 + $0x1c] sm:$0xff] }
  0x26   : > { %v394_v45 = vmul.f32 %v393_v27, %v388_v41  ;;  %v420_v61 = vld [vmem:[#allocation2 + $0x22] sm:$0xff] }
  0x27   : > { %v377_v48 = vadd.f32 %v375_v36, %v367_v43  ;;  %v386_v49 = vadd.f32 %v384_v44, %v376_v38  ;;  %v430_v0 = vld [vmem:[#allocation2 + $0x24] sm:$0xff] }
  0x28   : > { %v439_v3 = vld [vmem:[#allocation2 + $0x1e] sm:$0xff]  ;;  %v440_v4 = vld [vmem:[#allocation2 + $0x26] sm:$0xff] }
  0x29   : > { %v387_v52 = vadd.f32 %v385_v42, %v377_v48  ;;  %v396_v53 = vadd.f32 %v394_v45, %v386_v49  ;;  %v449_v11 = vld [vmem:[#allocation2 + $0x28] sm:$0xff] }
  0x2b   : > { %v405_v54 = vadd.f32 %v403_v50, %v396_v53  ;;  %v397_v55 = vadd.f32 %v395_v47, %v387_v52 }
  0x2d   : > { %849 = vmatprep.mubr.msk.f32.mxu0 %vm349_vm1, %v405_v54  ;;  %v406_v56 = vadd.f32 %v404_v51, %v397_v55 }
  0x2f   : > { %850 = vmatmul.mubr.msk.f32.vlgmr.msra.gmra.mrb[0].mxu0 %vm349_vm1, %v406_v56 }
  0x8a   : > { %v415_v57 = vpop.permute.xlu0 %414  ;;  %v433_v58 = vpop.permute.xlu1 %432 }
  0x8b   : > { %v417_v5 = vmul.f32 %v415_v57, %v411_v59  ;;  %v418_v8 = vmul.f32 %v415_v57, %v412_v62  ;;  %v435_v9 = vmul.f32 %v433_v58, %v429_v63  ;;  %v436_v10 = vmul.f32 %v433_v58, %v430_v0  ;;  %v806_v59 = vld [vmem:[%s1201_s4] ss:$0 sm:$0xff] }
  0x8e   : > { %v423_v1 = vpop.permute.xlu0 %422  ;;  %v443_v2 = vpop.permute.xlu1 %442 }
  0x8f   : > { %v425_v6 = vmul.f32 %v423_v1, %v419_v60  ;;  %v426_v7 = vmul.f32 %v423_v1, %v420_v61  ;;  %v445_v13 = vmul.f32 %v443_v2, %v439_v3  ;;  %v446_v14 = vmul.f32 %v443_v2, %v440_v4  ;;  %v808_v1 = vld [vmem:[%s1203_s6] ss:$0 sm:$0xff] }
  0x91   : > { %v427_v12 = vadd.f32 %v425_v6, %v417_v5  ;;  %v428_v15 = vadd.f32 %v426_v7, %v418_v8  ;;  %v685_v6 = vld [vmem:[%s343_s17] sm:$0xff]  ;;  %v686_v7 = vld [vmem:[%s343_s17 + $0x8] sm:$0xff] }
  0x92   : > { %v452_v16 = vpop.permute.xlu0 %451 }
  0x93   : > { %v437_v17 = vadd.f32 %v435_v9, %v427_v12  ;;  %v438_v18 = vadd.f32 %v436_v10, %v428_v15  ;;  %v454_v19 = vmul.f32 %v452_v16, %v412_v62  ;;  %v455_v20 = vmul.f32 %v452_v16, %v449_v11  ;;  %v807_v62 = vld [vmem:[%s1202_s5] ss:$0 sm:$0xff] }
  0x95   : > { %v447_v21 = vadd.f32 %v445_v13, %v437_v17  ;;  %v448_v22 = vadd.f32 %v446_v14, %v438_v18 }
  0x97   : > { %v457_v23 = vadd.f32 %v455_v20, %v448_v22  ;;  %v456_v24 = vadd.f32 %v454_v19, %v447_v21 }
  0x99   : > { %838 = vmatprep.mubr.msk.f32.mxu1 %vm349_vm1, %v456_v24 }
  0x9a   : > { %839 = vmatmul.mubr.msk.f32.vlgmr.msra.gmra.mrb[0].mxu1 %vm349_vm1, %v457_v23 }
 0x102   : > { %v851_v25 = vpop.f32.mrb[0].mxu0 }
 0x103   : > { %v615_v26 = vpop.f32.mrb[1].mxu0 }
 0x16d   : > { %v840_v27 = vpop.f32.mrb[0].mxu1 }
 0x16e   : > { %v621_v28 = vadd.f32 %v851_v25, %v840_v27  ;;  %v534_v29 = vpop.f32.mrb[1].mxu1 }
 0x16f   : > { %v616_v30 = vadd.f32 %v615_v26, %v534_v29 }
 0x170   : > { %v625_v31 = vsel %vm349_vm1, %v621_v28, 0.0  ;;  %v635_v32 = vmul.f32 %v621_v28, %v621_v28 }
 0x171   : > { %v624_v33 = vsel %vm349_vm1, %v616_v30, 0.0  ;;  %v634_v34 = vmul.f32 %v616_v30, %v616_v30 }
 0x172   : > { %v637_v35 = vsel %vm349_vm1, %v635_v32, 0.0  ;;  %v626_v36 = vadd.f32 %v625_v31, %v624_v33 }
 0x173   : > { %v636_v37 = vsel %vm349_vm1, %v634_v34, 0.0 }
 0x174   : > { %v627_v38 = vrot.slane %v626_v36, 4  ;;  %v638_v39 = vadd.f32 %v637_v35, %v636_v37 }
 0x176   : > { %v628_v40 = vadd.f32 %v627_v38, %v626_v36  ;;  %v639_v41 = vrot.slane %v638_v39, 4 }
 0x178   : > { %v629_v42 = vrot.slane %v628_v40, 2  ;;  %v640_v43 = vadd.f32 %v639_v41, %v638_v39 }
 0x17a   : > { %v630_v44 = vadd.f32 %v629_v42, %v628_v40  ;;  %v641_v45 = vrot.slane %v640_v43, 2 }
 0x17c   : > { %v631_v46 = vrot.slane %v630_v44, 1  ;;  %v642_v47 = vadd.f32 %v641_v45, %v640_v43 }
 0x17e   : > { %v632_v48 = vadd.f32 %v631_v46, %v630_v44  ;;  %v643_v49 = vrot.slane %v642_v47, 1 }
 0x180   : > { %v633_v50 = vmul.f32 0.0625, %v632_v48  ;;  %v644_v51 = vadd.f32 %v643_v49, %v642_v47 }
 0x182   : > { %v645_v52 = vmul.f32 0.0625, %v644_v51  ;;  %v646_v53 = vmul.f32 %v633_v50, %v633_v50  ;;  %v648_v54 = vsub.f32 %v616_v30, %v633_v50  ;;  %v649_v55 = vsub.f32 %v621_v28, %v633_v50 }
 0x184   : > { %v647_v56 = vsub.f32 %v645_v52, %v646_v53 }
 0x186   : > { %v650_v57 = vadd.f32 1e-05, %v647_v56 }
 0x188   : > { %913 = vrsqrt.f32 %v650_v57 }
 0x192   : > { %v914_v58 = vpop.eup %913 }
 0x193   : > { %v652_v60 = vmul.f32 %v914_v58, %v648_v54  ;;  %v653_v61 = vmul.f32 %v914_v58, %v649_v55 }
 0x195   : > { %v661_v63 = vmul.f32 %v806_v59, %v652_v60  ;;  %v662_v0 = vmul.f32 %v806_v59, %v653_v61 }
 0x197   : > { %v670_v2 = vadd.f32 %v807_v62, %v661_v63  ;;  %v671_v3 = vadd.f32 %v807_v62, %v662_v0 }
 0x199   : > { %vm672_vm2 = vcmp.ge.f32.partialorder %v670_v2, 0.0  ;;  %vm673_vm3 = vcmp.ge.f32.partialorder %v671_v3, 0.0  ;;  %v681_v4 = vmul.f32 %v808_v1, %v670_v2  ;;  %v682_v5 = vmul.f32 %v808_v1, %v671_v3 }
 0x19b   : > { %v683_v8 = vsel %vm672_vm2, %v670_v2, %v681_v4  ;;  %v684_v9 = vsel %vm673_vm3, %v671_v3, %v682_v5 }
 0x19c   : > { %v687_v10 = vadd.f32 %v685_v6, %v683_v8  ;;  %v688_v11 = vadd.f32 %v686_v7, %v684_v9 }
 0x19e   : > { %689 = vst.msk [vmem:[%s328_s19] sm:$0xff] %vm349_vm1, %v687_v10  ;;  %690 = vst.msk [vmem:[%s328_s19 + $0x8] sm:$0xff] %vm349_vm1, %v688_v11 }
 0x19f   : > { %928 = shalt.err (!%p925_p3)
}
 0x1a0   : > { %s929_s18 = scalar_lea.hbm %s1148_s26, 256  ;;  %s933_s23 = scalar_lea.hbm %s1205_s8, 512 }
 0x1a1   : > { %p930_p4 = scmp.ne.s32.totalorder %s1148_s26, %s929_s18  ;;  %p934_p9 = scmp.lt.u32.totalorder %s1148_s26, %s1205_s8 }
 0x1a2   : > { %p935_p10 = scmp.lt.u32.totalorder %s933_s23, %s929_s18  ;;  %p937_p12 = scmp.lt.u32.totalorder %s929_s18, %s1148_s26 }
 0x1a3   : > { %p931_p7 = pnand %p930_p4, %p1067_p5 }
 0x1a4   : > { %p936_p11 = por %p935_p10, %p934_p9 }
 0x1a5   : > { %p932_p8 = pneg %p931_p7 }
 0x1a6   : > { %p938_p13 = por %p937_p12, %p936_p11 }
 0x1a8   : > { %p939_p0 = pnand %p938_p13, %p932_p8 }
 0x1aa   : > { %942 = shalt.err (!%p939_p0)
}
 0x1ab   : > { %s982_s25 = smov 128   ;;  %s983_s24 = smov 8  }
 0x1ac   : > { %870 = dma.vmem_to_hbm [thread:$0]  (%p1067_p5), %s1150_s20, 256, %s1148_s26, %s1156_s9, %s982_s25, %s982_s25, %s983_s24  }
 0x1ad PF: > { %p876_p1 = scmp.ge.s32.totalorder %s977_s30, 2  ;;  %s720_s21 = sand.u32 1, %s965_s27  }
 0x1ae   : > { %s721_s10 = scalar_lea.sflag [#allocation4], %s720_s21 }
 0x1af   : > { %p873_p2 = pnand %p876_p1, %p1071_p6 }
 0x1b1   : > { %960 = dma.done.wait (!%p873_p2), %s721_s10, 256  }
 0x1b2   : > { %962 = vsyncadd (!%p873_p2), %s721_s10, 4294967040  ;;  %p18_p3 = scmp.ge.s32.totalorder %s1054_s11, 4   ;;  %s1208_s27 = smov %s969_s28 }
 0x1b3   : > { %s1209_s28 = smov %s973_s29  ;;  %s1210_s29 = smov %s1065_s14 }
 0x1b4   : > { %s1211_s30 = smov %s1054_s11  ;;  %20 = sbr.rel (!%p18_p3) target bundleno = 3 (0x3), region = 94 }
 0x1bb   :  { %726 = vsyncpa [#allocation4], 1 }
 0x1bc   :  { %728 = vsyncpa [#allocation4 + $0x1], 1 }

</bundles_post_ra>
